<compile_context>
chip_gen: v5e
topology: v5e:2x2
jax: 0.10.0
libtpu: 0.0.40
codegen_flags: <defaults>
</compile_context>

<pallas_src>
import math

import jax
import jax.numpy as jnp
from jax import lax
from jax.experimental import pallas as pl
from jax.experimental.pallas import tpu as pltpu

# ----------------------------- model config (small, synthetic) ---------------
VOCAB = 64
HIDDEN = 32
LAYERS = 2
HEADS = 2
HEAD_DIM = HIDDEN // HEADS
INTER = 64
MAX_POS = 40
PAD_IDX = 1           # XLM-R padding_idx (position-embedding offset)
EPS = 1e-5
LORA_R = 4
LORA_ALPHA = 8

_INV_SQRT2 = 1.0 / math.sqrt(2.0)
_ATTN_SCALE = 1.0 / math.sqrt(HEAD_DIM)

# ----------------------------- packed-operand layout --------------------------
# f32 vector bank: one row per 1-D parameter, lane-padded to 128.
VEC_W = 128
ROW_EMB_G, ROW_EMB_B = 0, 1
ROW_LAYER0, ROWS_PER_LAYER = 2, 8
# per-layer row offsets: +0 bqkv(96)  +1 bo  +2 ln1_g  +3 ln1_b
#                        +4 bi(64)    +5 bo2 +6 ln2_g  +7 ln2_b
ROW_LM_B = ROW_LAYER0 + LAYERS * ROWS_PER_LAYER        # 18
ROW_LM_LN_G = ROW_LM_B + 1
ROW_LM_LN_B = ROW_LM_B + 2
ROW_DEC_B = ROW_LM_B + 3
VEC_ROWS = ROW_DEC_B + 1                               # 22
VEC_ROWS_PAD = ((VEC_ROWS + 7) // 8) * 8               # 24

# bf16 blob of all weights whose input dim is HIDDEN, concatenated along columns.
VOCAB_PAD = 128                                        # lane-dense logits
COL_DEC = 0                                            # tied decoder (H, VOCAB) in 0:64
COL_LAYER0 = VOCAB_PAD                                 # 128
COL_QKV, COL_WO, COL_WI = 0, 3 * HIDDEN, 4 * HIDDEN    # offsets within a layer block
COL_PER_LAYER = 4 * HIDDEN + INTER                     # 192
COL_LMDENSE = COL_LAYER0 + LAYERS * COL_PER_LAYER      # 512
WH_COLS = COL_LMDENSE + HIDDEN                         # 544
WH_COLS_PAD = ((WH_COLS + 127) // 128) * 128           # 640


# ----------------------------- fused Pallas kernel ----------------------------

def _fused_forward_kernel(x_ref, bias_ref, vec_ref, wh_ref, wint_ref, o_ref):
    """Whole encoder stack + MLM head for the flattened batch; VMEM-resident."""
    f32 = jnp.float32
    bf16 = jnp.bfloat16

    def vrow(r, w):                         # (1, w) f32 row of the vector bank
        return vec_ref[r:r + 1, :w]

    def ln(v, g_row, b_row):                # layernorm in f32 (VPU)
        mu = jnp.mean(v, axis=-1, keepdims=True)
        var = jnp.mean(jnp.square(v - mu), axis=-1, keepdims=True)
        return (v - mu) * lax.rsqrt(var + EPS) * vrow(g_row, HIDDEN) + vrow(b_row, HIDDEN)

    def gelu(v):                            # exact erf GELU (HF XLM-R semantics)
        return 0.5 * v * (1.0 + lax.erf(v * _INV_SQRT2))

    def mm(a, w):                           # bf16 MXU operands, f32 accumulation
        return jnp.dot(a.astype(bf16), w.astype(bf16), preferred_element_type=f32)

    def mm_t(a, b):                         # a @ b.T without materializing a transpose
        return lax.dot_general(
            a.astype(bf16), b.astype(bf16),
            dimension_numbers=(((1,), (1,)), ((), ())),
            preferred_element_type=f32)

    bias = bias_ref[...]                                        # (M, M) additive mask
    x = ln(x_ref[...], ROW_EMB_G, ROW_EMB_B)                    # (M, H) f32
    rows = x.shape[0]

    for l in range(LAYERS):                                     # unrolled (2 layers)
        base = COL_LAYER0 + l * COL_PER_LAYER
        r = ROW_LAYER0 + l * ROWS_PER_LAYER

        # fused QKV projection; attention scale already folded into Wq/bq.
        qkv = mm(x, wh_ref[:, base + COL_QKV: base + COL_QKV + 3 * HIDDEN]) \
            + vrow(r + 0, 3 * HIDDEN)                           # (M, 3H)

        attn = jnp.zeros((rows, HIDDEN), f32)
        for h in range(HEADS):                                  # unrolled (2 heads)
            lo = h * HEAD_DIM
            q = qkv[:, lo:lo + HEAD_DIM]
            k = qkv[:, HIDDEN + lo:HIDDEN + lo + HEAD_DIM]
            v = qkv[:, 2 * HIDDEN + lo:2 * HIDDEN + lo + HEAD_DIM]

            s = mm_t(q, k) + bias                               # (M, M)
            m = jnp.max(s, axis=-1, keepdims=True)
            p = jnp.exp(s - m)
            p = p * pl.reciprocal(jnp.sum(p, axis=-1, keepdims=True), approx=True)
            ctx = mm(p, v)                                      # (M, HEAD_DIM)

            # head concat folded into the output projection: accumulate partials.
            wo_h = wh_ref[lo:lo + HEAD_DIM, base + COL_WO: base + COL_WO + HIDDEN]
            attn = attn + mm(ctx, wo_h)                         # (M, H)

        x = ln(x + attn + vrow(r + 1, HIDDEN), r + 2, r + 3)

        ffn = gelu(mm(x, wh_ref[:, base + COL_WI: base + COL_WI + INTER])
                   + vrow(r + 4, INTER))                        # (M, INTER)
        ffn_out = mm(ffn, wint_ref[:, l * HIDDEN:(l + 1) * HIDDEN]) + vrow(r + 5, HIDDEN)
        x = ln(x + ffn_out, r + 6, r + 7)

    # --- MLM head: dense + GELU + layernorm + tied decoder (pre-transposed, padded) ---
    h_ = gelu(mm(x, wh_ref[:, COL_LMDENSE:COL_LMDENSE + HIDDEN]) + vrow(ROW_LM_B, HIDDEN))
    h_ = ln(h_, ROW_LM_LN_G, ROW_LM_LN_B)
    logits = mm(h_, wh_ref[:, COL_DEC:COL_DEC + VOCAB_PAD]) + vrow(ROW_DEC_B, VOCAB_PAD)
    o_ref[...] = logits.astype(o_ref.dtype)                     # (M, 128) lane-dense store


# ----------------------------- parameters -------------------------------------

def init_params(key):
    def nrm(key, shape, std=0.02):
        return std * jax.random.normal(key, shape, dtype=jnp.float32)

    keys = iter(jax.random.split(key, 256))
    p = {}
    p["word_emb"] = nrm(next(keys), (VOCAB, HIDDEN))
    p["pos_emb"] = nrm(next(keys), (MAX_POS, HIDDEN))
    p["type_emb"] = nrm(next(keys), (1, HIDDEN))
    p["emb_ln_g"] = jnp.ones((HIDDEN,), jnp.float32)
    p["emb_ln_b"] = jnp.zeros((HIDDEN,), jnp.float32)

    layers = []
    for _ in range(LAYERS):
        lyr = {}
        for name in ("q", "k", "v", "o"):
            lyr[f"W{name}"] = nrm(next(keys), (HIDDEN, HIDDEN))
            lyr[f"b{name}"] = jnp.zeros((HIDDEN,), jnp.float32)
        # LoRA adapters on query / value (peft default for RoBERTa):
        # A ~ N(0, 0.02), B = zeros  -> folded: W_eff = W + (alpha/r) * A @ B
        for name in ("q", "v"):
            lyr[f"lora_A_{name}"] = nrm(next(keys), (HIDDEN, LORA_R))
            lyr[f"lora_B_{name}"] = jnp.zeros((LORA_R, HIDDEN), jnp.float32)
        lyr["attn_ln_g"] = jnp.ones((HIDDEN,), jnp.float32)
        lyr["attn_ln_b"] = jnp.zeros((HIDDEN,), jnp.float32)
        lyr["Wi"] = nrm(next(keys), (HIDDEN, INTER))
        lyr["bi"] = jnp.zeros((INTER,), jnp.float32)
        lyr["Wo2"] = nrm(next(keys), (INTER, HIDDEN))
        lyr["bo2"] = jnp.zeros((HIDDEN,), jnp.float32)
        lyr["ffn_ln_g"] = jnp.ones((HIDDEN,), jnp.float32)
        lyr["ffn_ln_b"] = jnp.zeros((HIDDEN,), jnp.float32)
        layers.append(lyr)
    p["layers"] = layers

    p["lm_dense_W"] = nrm(next(keys), (HIDDEN, HIDDEN))
    p["lm_dense_b"] = jnp.zeros((HIDDEN,), jnp.float32)
    p["lm_ln_g"] = jnp.ones((HIDDEN,), jnp.float32)
    p["lm_ln_b"] = jnp.zeros((HIDDEN,), jnp.float32)
    p["lm_decoder_b"] = jnp.zeros((VOCAB,), jnp.float32)  # decoder weight tied to word_emb
    return p


def fold_params(p):
    """One-time (host-side) inference prep:
       - fold LoRA into Wq/Wv, fold 1/sqrt(head_dim) into Wq/bq,
       - concat QKV, pre-transpose + lane-pad the tied decoder weight,
       - pack all 1-D params into one f32 vector bank,
       - pack all matmul weights into two bf16 blobs."""
    scale = LORA_ALPHA / LORA_R

    vecs = jnp.zeros((VEC_ROWS_PAD, VEC_W), jnp.float32)

    def put(vs, r, v):
        return vs.at[r, :v.shape[0]].set(v)

    vecs = put(vecs, ROW_EMB_G, p["emb_ln_g"])
    vecs = put(vecs, ROW_EMB_B, p["emb_ln_b"])

    w_hid = jnp.zeros((HIDDEN, WH_COLS_PAD), jnp.float32)
    w_int = jnp.zeros((INTER, LAYERS * HIDDEN), jnp.float32)

    # tied decoder weight, pre-transposed to (H, VOCAB) and lane-padded to 128 cols.
    w_hid = w_hid.at[:, COL_DEC:COL_DEC + VOCAB].set(p["word_emb"].T)
    vecs = put(vecs, ROW_DEC_B, p["lm_decoder_b"])

    for l, lyr in enumerate(p["layers"]):
        Wq = lyr["Wq"] + scale * (lyr["lora_A_q"] @ lyr["lora_B_q"])
        Wv = lyr["Wv"] + scale * (lyr["lora_A_v"] @ lyr["lora_B_v"])
        Wq = Wq * _ATTN_SCALE                       # attention scale folded into Wq/bq
        bq = lyr["bq"] * _ATTN_SCALE
        wqkv = jnp.concatenate([Wq, lyr["Wk"], Wv], axis=1)
        bqkv = jnp.concatenate([bq, lyr["bk"], lyr["bv"]])

        base = COL_LAYER0 + l * COL_PER_LAYER
        w_hid = w_hid.at[:, base + COL_QKV: base + COL_QKV + 3 * HIDDEN].set(wqkv)
        w_hid = w_hid.at[:, base + COL_WO: base + COL_WO + HIDDEN].set(lyr["Wo"])
        w_hid = w_hid.at[:, base + COL_WI: base + COL_WI + INTER].set(lyr["Wi"])
        w_int = w_int.at[:, l * HIDDEN:(l + 1) * HIDDEN].set(lyr["Wo2"])

        r = ROW_LAYER0 + l * ROWS_PER_LAYER
        vecs = put(vecs, r + 0, bqkv)
        vecs = put(vecs, r + 1, lyr["bo"])
        vecs = put(vecs, r + 2, lyr["attn_ln_g"])
        vecs = put(vecs, r + 3, lyr["attn_ln_b"])
        vecs = put(vecs, r + 4, lyr["bi"])
        vecs = put(vecs, r + 5, lyr["bo2"])
        vecs = put(vecs, r + 6, lyr["ffn_ln_g"])
        vecs = put(vecs, r + 7, lyr["ffn_ln_b"])

    w_hid = w_hid.at[:, COL_LMDENSE:COL_LMDENSE + HIDDEN].set(p["lm_dense_W"])
    vecs = put(vecs, ROW_LM_B, p["lm_dense_b"])
    vecs = put(vecs, ROW_LM_LN_G, p["lm_ln_g"])
    vecs = put(vecs, ROW_LM_LN_B, p["lm_ln_b"])

    return {
        "word_emb": p["word_emb"],          # f32 for the embedding gather
        "pos_emb": p["pos_emb"],
        "type_emb": p["type_emb"],
        "vecs": vecs,                        # (24, 128) f32  — all biases / LN params
        "w_hid": w_hid.astype(jnp.bfloat16),  # (32, 640) bf16 — all H-row weights
        "w_int": w_int.astype(jnp.bfloat16),  # (64, 64)  bf16 — FFN down-projections
    }


# ----------------------------- forward pass ------------------------------------

def xlm_roberta_forward(fp, input_ids, attention_mask):
    B, S = input_ids.shape
    M = B * S

    # --- embeddings (gathers stay in plain JAX glue) ---
    # XLM-R position ids are derived from (input_ids != padding_idx), HF-style.
    pad_mask = (input_ids != PAD_IDX).astype(jnp.int32)
    pos_ids = jnp.cumsum(pad_mask, axis=1) * pad_mask + PAD_IDX
    emb = (jnp.take(fp["word_emb"], input_ids, axis=0)
           + jnp.take(fp["pos_emb"], pos_ids, axis=0)
           + fp["type_emb"][0])
    x_emb = emb.reshape(M, HIDDEN).astype(jnp.float32)

    # Block-diagonal additive attention bias over the flattened batch:
    # (query b,i) may attend to (key b2,j) only if b == b2 and mask[b2, j] == 1.
    same_batch = jnp.eye(B, dtype=bool)                                    # (B, B)
    valid_key = attention_mask.astype(bool)                               # (B, S)
    allowed = same_batch[:, None, :, None] & valid_key[None, None, :, :]   # (B,1,B,S)
    allowed = jnp.broadcast_to(allowed, (B, S, B, S)).reshape(M, M)
    bias = jnp.where(allowed, 0.0, -1e9).astype(jnp.float32)

    def full_spec(shape):   # whole-array VMEM-resident operand (single grid step)
        return pl.BlockSpec(shape, lambda i: (0,) * len(shape))

    out = pl.pallas_call(
        _fused_forward_kernel,
        out_shape=jax.ShapeDtypeStruct((M, VOCAB_PAD), jnp.float32),
        grid=(1,),
        in_specs=[
            full_spec((M, HIDDEN)),                 # flattened embeddings
            full_spec((M, M)),                      # block-diagonal mask bias
            full_spec((VEC_ROWS_PAD, VEC_W)),       # packed f32 vector bank
            full_spec((HIDDEN, WH_COLS_PAD)),       # packed bf16 H-row weights
            full_spec((INTER, LAYERS * HIDDEN)),    # packed bf16 FFN down-proj
        ],
        out_specs=full_spec((M, VOCAB_PAD)),        # lane-dense (16, 128) store
        compiler_params=pltpu.CompilerParams(
            dimension_semantics=("arbitrary",)),
    )(x_emb, bias, fp["vecs"], fp["w_hid"], fp["w_int"])

    # drop the lane padding and restore (B, S, VOCAB)
    return out[:, :VOCAB].reshape(B, S, VOCAB)

    # TODO(synk): the PyTorch wrapper also returns an MLM cross-entropy loss when
    # `labels` is given; only logits are produced here.


# ----------------------------- main ---------------------------------------------

if __name__ == "__main__":
    key = jax.random.PRNGKey(0)
    pkey, dkey = jax.random.split(key)

    params = init_params(pkey)
    folded = fold_params(params)   # LoRA fold + scale fold + packing + bf16 cast, once

    B, S = 2, 8
    input_ids = jax.random.randint(dkey, (B, S), 0, VOCAB, dtype=jnp.int32)
    attention_mask = jnp.ones((B, S), dtype=jnp.int32)

    fwd = jax.jit(xlm_roberta_forward)
    logits = fwd(folded, input_ids, attention_mask)
    jax.block_until_ready(logits)

    assert logits.shape == (B, S, VOCAB)
    assert bool(jnp.all(jnp.isfinite(logits)))
    print("KERNEL_OK")
</pallas_src>

<mosaic_0001>
module attributes {stable_mosaic.version = 11 : i64} {
  func.func @_fused_forward_kernel(%arg0: i32, %arg1: memref<16x32xf32, #tpu.memory_space<vmem>>, %arg2: memref<16x16xf32, #tpu.memory_space<vmem>>, %arg3: memref<24x128xf32, #tpu.memory_space<vmem>>, %arg4: memref<32x640xbf16, #tpu.memory_space<vmem>>, %arg5: memref<64x64xbf16, #tpu.memory_space<vmem>>, %arg6: memref<16x128xf32, #tpu.memory_space<vmem>>) attributes {dimension_semantics = [#tpu.dimension_semantics<arbitrary>], iteration_bounds = array<i64: 1>, scalar_prefetch = 0 : i64, scratch_operands = 0 : i64, tpu.core_type = #tpu.core_type<tc>, window_params = [{pipeline_mode = #tpu.pipeline_mode<synchronous>, transform_indices = @transform_0, window_bounds = array<i64: 16, 32>}, {pipeline_mode = #tpu.pipeline_mode<synchronous>, transform_indices = @transform_1, window_bounds = array<i64: 16, 16>}, {pipeline_mode = #tpu.pipeline_mode<synchronous>, transform_indices = @transform_2, window_bounds = array<i64: 24, 128>}, {pipeline_mode = #tpu.pipeline_mode<synchronous>, transform_indices = @transform_3, window_bounds = array<i64: 32, 640>}, {pipeline_mode = #tpu.pipeline_mode<synchronous>, transform_indices = @transform_4, window_bounds = array<i64: 64, 64>}, {pipeline_mode = #tpu.pipeline_mode<synchronous>, transform_indices = @transform_5, window_bounds = array<i64: 16, 128>}]} {
    %c0 = arith.constant 0 : index
    %c0_0 = arith.constant 0 : index
    %0 = vector.load %arg2[%c0, %c0_0] : memref<16x16xf32, #tpu.memory_space<vmem>>, vector<16x16xf32>
    %c0_1 = arith.constant 0 : index
    %c0_2 = arith.constant 0 : index
    %1 = vector.load %arg1[%c0_1, %c0_2] : memref<16x32xf32, #tpu.memory_space<vmem>>, vector<16x32xf32>
    %cst = arith.constant dense<0.000000e+00> : vector<16xf32>
    %2 = vector.multi_reduction <add>, %1, %cst [1] : vector<16x32xf32> to vector<16xf32>
    %3 = vector.shape_cast %2 : vector<16xf32> to vector<16x1xf32>
    %cst_3 = arith.constant 3.200000e+01 : f32
    %4 = vector.broadcast %cst_3 : f32 to vector<16x1xf32>
    %5 = arith.divf %3, %4 : vector<16x1xf32>
    %6 = vector.broadcast %5 : vector<16x1xf32> to vector<16x32xf32>
    %7 = arith.subf %1, %6 : vector<16x32xf32>
    %8 = arith.mulf %7, %7 : vector<16x32xf32>
    %cst_4 = arith.constant dense<0.000000e+00> : vector<16xf32>
    %9 = vector.multi_reduction <add>, %8, %cst_4 [1] : vector<16x32xf32> to vector<16xf32>
    %10 = vector.shape_cast %9 : vector<16xf32> to vector<16x1xf32>
    %cst_5 = arith.constant 3.200000e+01 : f32
    %11 = vector.broadcast %cst_5 : f32 to vector<16x1xf32>
    %12 = arith.divf %10, %11 : vector<16x1xf32>
    %13 = vector.broadcast %5 : vector<16x1xf32> to vector<16x32xf32>
    %14 = arith.subf %1, %13 : vector<16x32xf32>
    %cst_6 = arith.constant 9.99999974E-6 : f32
    %15 = vector.broadcast %cst_6 : f32 to vector<16x1xf32>
    %16 = arith.addf %12, %15 : vector<16x1xf32>
    %17 = math.rsqrt %16 : vector<16x1xf32>
    %18 = vector.broadcast %17 : vector<16x1xf32> to vector<16x32xf32>
    %19 = arith.mulf %14, %18 : vector<16x32xf32>
    %c0_7 = arith.constant 0 : index
    %c0_8 = arith.constant 0 : index
    %20 = vector.load %arg3[%c0_7, %c0_8] : memref<24x128xf32, #tpu.memory_space<vmem>>, vector<1x32xf32>
    %21 = vector.broadcast %20 : vector<1x32xf32> to vector<16x32xf32>
    %22 = arith.mulf %19, %21 : vector<16x32xf32>
    %c1 = arith.constant 1 : index
    %c0_9 = arith.constant 0 : index
    %23 = vector.load %arg3[%c1, %c0_9] : memref<24x128xf32, #tpu.memory_space<vmem>>, vector<1x32xf32>
    %24 = vector.broadcast %23 : vector<1x32xf32> to vector<16x32xf32>
    %25 = arith.addf %22, %24 : vector<16x32xf32>
    %c0_10 = arith.constant 0 : index
    %c128 = arith.constant 128 : index
    %26 = vector.load %arg4[%c0_10, %c128] : memref<32x640xbf16, #tpu.memory_space<vmem>>, vector<32x96xbf16>
    %27 = arith.truncf %25 : vector<16x32xf32> to vector<16x32xbf16>
    %cst_11 = arith.constant dense<0.000000e+00> : vector<16x96xf32>
    %28 = tpu.matmul %27, %26, %cst_11 {dimension_numbers = #tpu.dot_dimension_numbers<[1], [0], [0], [1], [0, 0, 1, 1], [], []>} : vector<16x32xbf16>, vector<32x96xbf16>, vector<16x96xf32> -> vector<16x96xf32>
    %c2 = arith.constant 2 : index
    %c0_12 = arith.constant 0 : index
    %29 = vector.load %arg3[%c2, %c0_12] : memref<24x128xf32, #tpu.memory_space<vmem>>, vector<1x96xf32>
    %30 = vector.broadcast %29 : vector<1x96xf32> to vector<16x96xf32>
    %31 = arith.addf %28, %30 : vector<16x96xf32>
    %cst_13 = arith.constant 0.000000e+00 : f32
    %32 = vector.broadcast %cst_13 : f32 to vector<16x32xf32>
    %33 = vector.extract_strided_slice %31 {offsets = [0, 0], sizes = [16, 16], strides = [1, 1]} : vector<16x96xf32> to vector<16x16xf32>
    %34 = vector.extract_strided_slice %31 {offsets = [0, 32], sizes = [16, 16], strides = [1, 1]} : vector<16x96xf32> to vector<16x16xf32>
    %35 = vector.extract_strided_slice %31 {offsets = [0, 64], sizes = [16, 16], strides = [1, 1]} : vector<16x96xf32> to vector<16x16xf32>
    %36 = arith.truncf %33 : vector<16x16xf32> to vector<16x16xbf16>
    %37 = arith.truncf %34 : vector<16x16xf32> to vector<16x16xbf16>
    %cst_14 = arith.constant dense<0.000000e+00> : vector<16x16xf32>
    %38 = tpu.matmul %36, %37, %cst_14 {dimension_numbers = #tpu.dot_dimension_numbers<[1], [1], [0], [0], [0, 0, 1, 0], [], []>} : vector<16x16xbf16>, vector<16x16xbf16>, vector<16x16xf32> -> vector<16x16xf32>
    %39 = arith.addf %38, %0 : vector<16x16xf32>
    %cst_15 = arith.constant dense<0xFF800000> : vector<16xf32>
    %40 = vector.multi_reduction <maximumf>, %39, %cst_15 [1] : vector<16x16xf32> to vector<16xf32>
    %41 = vector.shape_cast %40 : vector<16xf32> to vector<16x1xf32>
    %42 = vector.broadcast %41 : vector<16x1xf32> to vector<16x16xf32>
    %43 = arith.subf %39, %42 : vector<16x16xf32>
    %44 = math.exp %43 : vector<16x16xf32>
    %cst_16 = arith.constant dense<0.000000e+00> : vector<16xf32>
    %45 = vector.multi_reduction <add>, %44, %cst_16 [1] : vector<16x16xf32> to vector<16xf32>
    %46 = vector.shape_cast %45 : vector<16xf32> to vector<16x1xf32>
    %47 = tpu.reciprocal %46 {approx = true} : vector<16x1xf32> -> vector<16x1xf32>
    %48 = vector.broadcast %47 : vector<16x1xf32> to vector<16x16xf32>
    %49 = arith.mulf %44, %48 : vector<16x16xf32>
    %50 = arith.truncf %49 : vector<16x16xf32> to vector<16x16xbf16>
    %51 = arith.truncf %35 : vector<16x16xf32> to vector<16x16xbf16>
    %cst_17 = arith.constant dense<0.000000e+00> : vector<16x16xf32>
    %52 = tpu.matmul %50, %51, %cst_17 {dimension_numbers = #tpu.dot_dimension_numbers<[1], [0], [0], [1], [0, 0, 1, 1], [], []>} : vector<16x16xbf16>, vector<16x16xbf16>, vector<16x16xf32> -> vector<16x16xf32>
    %c0_18 = arith.constant 0 : index
    %c224 = arith.constant 224 : index
    %53 = vector.load %arg4[%c0_18, %c224] : memref<32x640xbf16, #tpu.memory_space<vmem>>, vector<16x32xbf16>
    %54 = arith.truncf %52 : vector<16x16xf32> to vector<16x16xbf16>
    %cst_19 = arith.constant dense<0.000000e+00> : vector<16x32xf32>
    %55 = tpu.matmul %54, %53, %cst_19 {dimension_numbers = #tpu.dot_dimension_numbers<[1], [0], [0], [1], [0, 0, 1, 1], [], []>} : vector<16x16xbf16>, vector<16x32xbf16>, vector<16x32xf32> -> vector<16x32xf32>
    %56 = arith.addf %32, %55 : vector<16x32xf32>
    %57 = vector.extract_strided_slice %31 {offsets = [0, 16], sizes = [16, 16], strides = [1, 1]} : vector<16x96xf32> to vector<16x16xf32>
    %58 = vector.extract_strided_slice %31 {offsets = [0, 48], sizes = [16, 16], strides = [1, 1]} : vector<16x96xf32> to vector<16x16xf32>
    %59 = vector.extract_strided_slice %31 {offsets = [0, 80], sizes = [16, 16], strides = [1, 1]} : vector<16x96xf32> to vector<16x16xf32>
    %60 = arith.truncf %57 : vector<16x16xf32> to vector<16x16xbf16>
    %61 = arith.truncf %58 : vector<16x16xf32> to vector<16x16xbf16>
    %cst_20 = arith.constant dense<0.000000e+00> : vector<16x16xf32>
    %62 = tpu.matmul %60, %61, %cst_20 {dimension_numbers = #tpu.dot_dimension_numbers<[1], [1], [0], [0], [0, 0, 1, 0], [], []>} : vector<16x16xbf16>, vector<16x16xbf16>, vector<16x16xf32> -> vector<16x16xf32>
    %63 = arith.addf %62, %0 : vector<16x16xf32>
    %cst_21 = arith.constant dense<0xFF800000> : vector<16xf32>
    %64 = vector.multi_reduction <maximumf>, %63, %cst_21 [1] : vector<16x16xf32> to vector<16xf32>
    %65 = vector.shape_cast %64 : vector<16xf32> to vector<16x1xf32>
    %66 = vector.broadcast %65 : vector<16x1xf32> to vector<16x16xf32>
    %67 = arith.subf %63, %66 : vector<16x16xf32>
    %68 = math.exp %67 : vector<16x16xf32>
    %cst_22 = arith.constant dense<0.000000e+00> : vector<16xf32>
    %69 = vector.multi_reduction <add>, %68, %cst_22 [1] : vector<16x16xf32> to vector<16xf32>
    %70 = vector.shape_cast %69 : vector<16xf32> to vector<16x1xf32>
    %71 = tpu.reciprocal %70 {approx = true} : vector<16x1xf32> -> vector<16x1xf32>
    %72 = vector.broadcast %71 : vector<16x1xf32> to vector<16x16xf32>
    %73 = arith.mulf %68, %72 : vector<16x16xf32>
    %74 = arith.truncf %73 : vector<16x16xf32> to vector<16x16xbf16>
    %75 = arith.truncf %59 : vector<16x16xf32> to vector<16x16xbf16>
    %cst_23 = arith.constant dense<0.000000e+00> : vector<16x16xf32>
    %76 = tpu.matmul %74, %75, %cst_23 {dimension_numbers = #tpu.dot_dimension_numbers<[1], [0], [0], [1], [0, 0, 1, 1], [], []>} : vector<16x16xbf16>, vector<16x16xbf16>, vector<16x16xf32> -> vector<16x16xf32>
    %c16 = arith.constant 16 : index
    %c224_24 = arith.constant 224 : index
    %77 = vector.load %arg4[%c16, %c224_24] : memref<32x640xbf16, #tpu.memory_space<vmem>>, vector<16x32xbf16>
    %78 = arith.truncf %76 : vector<16x16xf32> to vector<16x16xbf16>
    %cst_25 = arith.constant dense<0.000000e+00> : vector<16x32xf32>
    %79 = tpu.matmul %78, %77, %cst_25 {dimension_numbers = #tpu.dot_dimension_numbers<[1], [0], [0], [1], [0, 0, 1, 1], [], []>} : vector<16x16xbf16>, vector<16x32xbf16>, vector<16x32xf32> -> vector<16x32xf32>
    %80 = arith.addf %56, %79 : vector<16x32xf32>
    %81 = arith.addf %25, %80 : vector<16x32xf32>
    %c3 = arith.constant 3 : index
    %c0_26 = arith.constant 0 : index
    %82 = vector.load %arg3[%c3, %c0_26] : memref<24x128xf32, #tpu.memory_space<vmem>>, vector<1x32xf32>
    %83 = vector.broadcast %82 : vector<1x32xf32> to vector<16x32xf32>
    %84 = arith.addf %81, %83 : vector<16x32xf32>
    %cst_27 = arith.constant dense<0.000000e+00> : vector<16xf32>
    %85 = vector.multi_reduction <add>, %84, %cst_27 [1] : vector<16x32xf32> to vector<16xf32>
    %86 = vector.shape_cast %85 : vector<16xf32> to vector<16x1xf32>
    %cst_28 = arith.constant 3.200000e+01 : f32
    %87 = vector.broadcast %cst_28 : f32 to vector<16x1xf32>
    %88 = arith.divf %86, %87 : vector<16x1xf32>
    %89 = vector.broadcast %88 : vector<16x1xf32> to vector<16x32xf32>
    %90 = arith.subf %84, %89 : vector<16x32xf32>
    %91 = arith.mulf %90, %90 : vector<16x32xf32>
    %cst_29 = arith.constant dense<0.000000e+00> : vector<16xf32>
    %92 = vector.multi_reduction <add>, %91, %cst_29 [1] : vector<16x32xf32> to vector<16xf32>
    %93 = vector.shape_cast %92 : vector<16xf32> to vector<16x1xf32>
    %cst_30 = arith.constant 3.200000e+01 : f32
    %94 = vector.broadcast %cst_30 : f32 to vector<16x1xf32>
    %95 = arith.divf %93, %94 : vector<16x1xf32>
    %96 = vector.broadcast %88 : vector<16x1xf32> to vector<16x32xf32>
    %97 = arith.subf %84, %96 : vector<16x32xf32>
    %cst_31 = arith.constant 9.99999974E-6 : f32
    %98 = vector.broadcast %cst_31 : f32 to vector<16x1xf32>
    %99 = arith.addf %95, %98 : vector<16x1xf32>
    %100 = math.rsqrt %99 : vector<16x1xf32>
    %101 = vector.broadcast %100 : vector<16x1xf32> to vector<16x32xf32>
    %102 = arith.mulf %97, %101 : vector<16x32xf32>
    %c4 = arith.constant 4 : index
    %c0_32 = arith.constant 0 : index
    %103 = vector.load %arg3[%c4, %c0_32] : memref<24x128xf32, #tpu.memory_space<vmem>>, vector<1x32xf32>
    %104 = vector.broadcast %103 : vector<1x32xf32> to vector<16x32xf32>
    %105 = arith.mulf %102, %104 : vector<16x32xf32>
    %c5 = arith.constant 5 : index
    %c0_33 = arith.constant 0 : index
    %106 = vector.load %arg3[%c5, %c0_33] : memref<24x128xf32, #tpu.memory_space<vmem>>, vector<1x32xf32>
    %107 = vector.broadcast %106 : vector<1x32xf32> to vector<16x32xf32>
    %108 = arith.addf %105, %107 : vector<16x32xf32>
    %c0_34 = arith.constant 0 : index
    %c256 = arith.constant 256 : index
    %109 = vector.load %arg4[%c0_34, %c256] : memref<32x640xbf16, #tpu.memory_space<vmem>>, vector<32x64xbf16>
    %110 = arith.truncf %108 : vector<16x32xf32> to vector<16x32xbf16>
    %cst_35 = arith.constant dense<0.000000e+00> : vector<16x64xf32>
    %111 = tpu.matmul %110, %109, %cst_35 {dimension_numbers = #tpu.dot_dimension_numbers<[1], [0], [0], [1], [0, 0, 1, 1], [], []>} : vector<16x32xbf16>, vector<32x64xbf16>, vector<16x64xf32> -> vector<16x64xf32>
    %c6 = arith.constant 6 : index
    %c0_36 = arith.constant 0 : index
    %112 = vector.load %arg3[%c6, %c0_36] : memref<24x128xf32, #tpu.memory_space<vmem>>, vector<1x64xf32>
    %113 = vector.broadcast %112 : vector<1x64xf32> to vector<16x64xf32>
    %114 = arith.addf %111, %113 : vector<16x64xf32>
    %cst_37 = arith.constant 5.000000e-01 : f32
    %115 = vector.broadcast %cst_37 : f32 to vector<16x64xf32>
    %116 = arith.mulf %115, %114 : vector<16x64xf32>
    %cst_38 = arith.constant 0.707106769 : f32
    %117 = vector.broadcast %cst_38 : f32 to vector<16x64xf32>
    %118 = arith.mulf %114, %117 : vector<16x64xf32>
    %119 = math.erf %118 : vector<16x64xf32>
    %cst_39 = arith.constant 1.000000e+00 : f32
    %120 = vector.broadcast %cst_39 : f32 to vector<16x64xf32>
    %121 = arith.addf %120, %119 : vector<16x64xf32>
    %122 = arith.mulf %116, %121 : vector<16x64xf32>
    %c0_40 = arith.constant 0 : index
    %c0_41 = arith.constant 0 : index
    %123 = vector.load %arg5[%c0_40, %c0_41] : memref<64x64xbf16, #tpu.memory_space<vmem>>, vector<64x32xbf16>
    %124 = arith.truncf %122 : vector<16x64xf32> to vector<16x64xbf16>
    %cst_42 = arith.constant dense<0.000000e+00> : vector<16x32xf32>
    %125 = tpu.matmul %124, %123, %cst_42 {dimension_numbers = #tpu.dot_dimension_numbers<[1], [0], [0], [1], [0, 0, 1, 1], [], []>} : vector<16x64xbf16>, vector<64x32xbf16>, vector<16x32xf32> -> vector<16x32xf32>
    %c7 = arith.constant 7 : index
    %c0_43 = arith.constant 0 : index
    %126 = vector.load %arg3[%c7, %c0_43] : memref<24x128xf32, #tpu.memory_space<vmem>>, vector<1x32xf32>
    %127 = vector.broadcast %126 : vector<1x32xf32> to vector<16x32xf32>
    %128 = arith.addf %125, %127 : vector<16x32xf32>
    %129 = arith.addf %108, %128 : vector<16x32xf32>
    %cst_44 = arith.constant dense<0.000000e+00> : vector<16xf32>
    %130 = vector.multi_reduction <add>, %129, %cst_44 [1] : vector<16x32xf32> to vector<16xf32>
    %131 = vector.shape_cast %130 : vector<16xf32> to vector<16x1xf32>
    %cst_45 = arith.constant 3.200000e+01 : f32
    %132 = vector.broadcast %cst_45 : f32 to vector<16x1xf32>
    %133 = arith.divf %131, %132 : vector<16x1xf32>
    %134 = vector.broadcast %133 : vector<16x1xf32> to vector<16x32xf32>
    %135 = arith.subf %129, %134 : vector<16x32xf32>
    %136 = arith.mulf %135, %135 : vector<16x32xf32>
    %cst_46 = arith.constant dense<0.000000e+00> : vector<16xf32>
    %137 = vector.multi_reduction <add>, %136, %cst_46 [1] : vector<16x32xf32> to vector<16xf32>
    %138 = vector.shape_cast %137 : vector<16xf32> to vector<16x1xf32>
    %cst_47 = arith.constant 3.200000e+01 : f32
    %139 = vector.broadcast %cst_47 : f32 to vector<16x1xf32>
    %140 = arith.divf %138, %139 : vector<16x1xf32>
    %141 = vector.broadcast %133 : vector<16x1xf32> to vector<16x32xf32>
    %142 = arith.subf %129, %141 : vector<16x32xf32>
    %cst_48 = arith.constant 9.99999974E-6 : f32
    %143 = vector.broadcast %cst_48 : f32 to vector<16x1xf32>
    %144 = arith.addf %140, %143 : vector<16x1xf32>
    %145 = math.rsqrt %144 : vector<16x1xf32>
    %146 = vector.broadcast %145 : vector<16x1xf32> to vector<16x32xf32>
    %147 = arith.mulf %142, %146 : vector<16x32xf32>
    %c8 = arith.constant 8 : index
    %c0_49 = arith.constant 0 : index
    %148 = vector.load %arg3[%c8, %c0_49] : memref<24x128xf32, #tpu.memory_space<vmem>>, vector<1x32xf32>
    %149 = vector.broadcast %148 : vector<1x32xf32> to vector<16x32xf32>
    %150 = arith.mulf %147, %149 : vector<16x32xf32>
    %c9 = arith.constant 9 : index
    %c0_50 = arith.constant 0 : index
    %151 = vector.load %arg3[%c9, %c0_50] : memref<24x128xf32, #tpu.memory_space<vmem>>, vector<1x32xf32>
    %152 = vector.broadcast %151 : vector<1x32xf32> to vector<16x32xf32>
    %153 = arith.addf %150, %152 : vector<16x32xf32>
    %c0_51 = arith.constant 0 : index
    %c320 = arith.constant 320 : index
    %154 = vector.load %arg4[%c0_51, %c320] : memref<32x640xbf16, #tpu.memory_space<vmem>>, vector<32x96xbf16>
    %155 = arith.truncf %153 : vector<16x32xf32> to vector<16x32xbf16>
    %cst_52 = arith.constant dense<0.000000e+00> : vector<16x96xf32>
    %156 = tpu.matmul %155, %154, %cst_52 {dimension_numbers = #tpu.dot_dimension_numbers<[1], [0], [0], [1], [0, 0, 1, 1], [], []>} : vector<16x32xbf16>, vector<32x96xbf16>, vector<16x96xf32> -> vector<16x96xf32>
    %c10 = arith.constant 10 : index
    %c0_53 = arith.constant 0 : index
    %157 = vector.load %arg3[%c10, %c0_53] : memref<24x128xf32, #tpu.memory_space<vmem>>, vector<1x96xf32>
    %158 = vector.broadcast %157 : vector<1x96xf32> to vector<16x96xf32>
    %159 = arith.addf %156, %158 : vector<16x96xf32>
    %cst_54 = arith.constant 0.000000e+00 : f32
    %160 = vector.broadcast %cst_54 : f32 to vector<16x32xf32>
    %161 = vector.extract_strided_slice %159 {offsets = [0, 0], sizes = [16, 16], strides = [1, 1]} : vector<16x96xf32> to vector<16x16xf32>
    %162 = vector.extract_strided_slice %159 {offsets = [0, 32], sizes = [16, 16], strides = [1, 1]} : vector<16x96xf32> to vector<16x16xf32>
    %163 = vector.extract_strided_slice %159 {offsets = [0, 64], sizes = [16, 16], strides = [1, 1]} : vector<16x96xf32> to vector<16x16xf32>
    %164 = arith.truncf %161 : vector<16x16xf32> to vector<16x16xbf16>
    %165 = arith.truncf %162 : vector<16x16xf32> to vector<16x16xbf16>
    %cst_55 = arith.constant dense<0.000000e+00> : vector<16x16xf32>
    %166 = tpu.matmul %164, %165, %cst_55 {dimension_numbers = #tpu.dot_dimension_numbers<[1], [1], [0], [0], [0, 0, 1, 0], [], []>} : vector<16x16xbf16>, vector<16x16xbf16>, vector<16x16xf32> -> vector<16x16xf32>
    %167 = arith.addf %166, %0 : vector<16x16xf32>
    %cst_56 = arith.constant dense<0xFF800000> : vector<16xf32>
    %168 = vector.multi_reduction <maximumf>, %167, %cst_56 [1] : vector<16x16xf32> to vector<16xf32>
    %169 = vector.shape_cast %168 : vector<16xf32> to vector<16x1xf32>
    %170 = vector.broadcast %169 : vector<16x1xf32> to vector<16x16xf32>
    %171 = arith.subf %167, %170 : vector<16x16xf32>
    %172 = math.exp %171 : vector<16x16xf32>
    %cst_57 = arith.constant dense<0.000000e+00> : vector<16xf32>
    %173 = vector.multi_reduction <add>, %172, %cst_57 [1] : vector<16x16xf32> to vector<16xf32>
    %174 = vector.shape_cast %173 : vector<16xf32> to vector<16x1xf32>
    %175 = tpu.reciprocal %174 {approx = true} : vector<16x1xf32> -> vector<16x1xf32>
    %176 = vector.broadcast %175 : vector<16x1xf32> to vector<16x16xf32>
    %177 = arith.mulf %172, %176 : vector<16x16xf32>
    %178 = arith.truncf %177 : vector<16x16xf32> to vector<16x16xbf16>
    %179 = arith.truncf %163 : vector<16x16xf32> to vector<16x16xbf16>
    %cst_58 = arith.constant dense<0.000000e+00> : vector<16x16xf32>
    %180 = tpu.matmul %178, %179, %cst_58 {dimension_numbers = #tpu.dot_dimension_numbers<[1], [0], [0], [1], [0, 0, 1, 1], [], []>} : vector<16x16xbf16>, vector<16x16xbf16>, vector<16x16xf32> -> vector<16x16xf32>
    %c0_59 = arith.constant 0 : index
    %c416 = arith.constant 416 : index
    %181 = vector.load %arg4[%c0_59, %c416] : memref<32x640xbf16, #tpu.memory_space<vmem>>, vector<16x32xbf16>
    %182 = arith.truncf %180 : vector<16x16xf32> to vector<16x16xbf16>
    %cst_60 = arith.constant dense<0.000000e+00> : vector<16x32xf32>
    %183 = tpu.matmul %182, %181, %cst_60 {dimension_numbers = #tpu.dot_dimension_numbers<[1], [0], [0], [1], [0, 0, 1, 1], [], []>} : vector<16x16xbf16>, vector<16x32xbf16>, vector<16x32xf32> -> vector<16x32xf32>
    %184 = arith.addf %160, %183 : vector<16x32xf32>
    %185 = vector.extract_strided_slice %159 {offsets = [0, 16], sizes = [16, 16], strides = [1, 1]} : vector<16x96xf32> to vector<16x16xf32>
    %186 = vector.extract_strided_slice %159 {offsets = [0, 48], sizes = [16, 16], strides = [1, 1]} : vector<16x96xf32> to vector<16x16xf32>
    %187 = vector.extract_strided_slice %159 {offsets = [0, 80], sizes = [16, 16], strides = [1, 1]} : vector<16x96xf32> to vector<16x16xf32>
    %188 = arith.truncf %185 : vector<16x16xf32> to vector<16x16xbf16>
    %189 = arith.truncf %186 : vector<16x16xf32> to vector<16x16xbf16>
    %cst_61 = arith.constant dense<0.000000e+00> : vector<16x16xf32>
    %190 = tpu.matmul %188, %189, %cst_61 {dimension_numbers = #tpu.dot_dimension_numbers<[1], [1], [0], [0], [0, 0, 1, 0], [], []>} : vector<16x16xbf16>, vector<16x16xbf16>, vector<16x16xf32> -> vector<16x16xf32>
    %191 = arith.addf %190, %0 : vector<16x16xf32>
    %cst_62 = arith.constant dense<0xFF800000> : vector<16xf32>
    %192 = vector.multi_reduction <maximumf>, %191, %cst_62 [1] : vector<16x16xf32> to vector<16xf32>
    %193 = vector.shape_cast %192 : vector<16xf32> to vector<16x1xf32>
    %194 = vector.broadcast %193 : vector<16x1xf32> to vector<16x16xf32>
    %195 = arith.subf %191, %194 : vector<16x16xf32>
    %196 = math.exp %195 : vector<16x16xf32>
    %cst_63 = arith.constant dense<0.000000e+00> : vector<16xf32>
    %197 = vector.multi_reduction <add>, %196, %cst_63 [1] : vector<16x16xf32> to vector<16xf32>
    %198 = vector.shape_cast %197 : vector<16xf32> to vector<16x1xf32>
    %199 = tpu.reciprocal %198 {approx = true} : vector<16x1xf32> -> vector<16x1xf32>
    %200 = vector.broadcast %199 : vector<16x1xf32> to vector<16x16xf32>
    %201 = arith.mulf %196, %200 : vector<16x16xf32>
    %202 = arith.truncf %201 : vector<16x16xf32> to vector<16x16xbf16>
    %203 = arith.truncf %187 : vector<16x16xf32> to vector<16x16xbf16>
    %cst_64 = arith.constant dense<0.000000e+00> : vector<16x16xf32>
    %204 = tpu.matmul %202, %203, %cst_64 {dimension_numbers = #tpu.dot_dimension_numbers<[1], [0], [0], [1], [0, 0, 1, 1], [], []>} : vector<16x16xbf16>, vector<16x16xbf16>, vector<16x16xf32> -> vector<16x16xf32>
    %c16_65 = arith.constant 16 : index
    %c416_66 = arith.constant 416 : index
    %205 = vector.load %arg4[%c16_65, %c416_66] : memref<32x640xbf16, #tpu.memory_space<vmem>>, vector<16x32xbf16>
    %206 = arith.truncf %204 : vector<16x16xf32> to vector<16x16xbf16>
    %cst_67 = arith.constant dense<0.000000e+00> : vector<16x32xf32>
    %207 = tpu.matmul %206, %205, %cst_67 {dimension_numbers = #tpu.dot_dimension_numbers<[1], [0], [0], [1], [0, 0, 1, 1], [], []>} : vector<16x16xbf16>, vector<16x32xbf16>, vector<16x32xf32> -> vector<16x32xf32>
    %208 = arith.addf %184, %207 : vector<16x32xf32>
    %209 = arith.addf %153, %208 : vector<16x32xf32>
    %c11 = arith.constant 11 : index
    %c0_68 = arith.constant 0 : index
    %210 = vector.load %arg3[%c11, %c0_68] : memref<24x128xf32, #tpu.memory_space<vmem>>, vector<1x32xf32>
    %211 = vector.broadcast %210 : vector<1x32xf32> to vector<16x32xf32>
    %212 = arith.addf %209, %211 : vector<16x32xf32>
    %cst_69 = arith.constant dense<0.000000e+00> : vector<16xf32>
    %213 = vector.multi_reduction <add>, %212, %cst_69 [1] : vector<16x32xf32> to vector<16xf32>
    %214 = vector.shape_cast %213 : vector<16xf32> to vector<16x1xf32>
    %cst_70 = arith.constant 3.200000e+01 : f32
    %215 = vector.broadcast %cst_70 : f32 to vector<16x1xf32>
    %216 = arith.divf %214, %215 : vector<16x1xf32>
    %217 = vector.broadcast %216 : vector<16x1xf32> to vector<16x32xf32>
    %218 = arith.subf %212, %217 : vector<16x32xf32>
    %219 = arith.mulf %218, %218 : vector<16x32xf32>
    %cst_71 = arith.constant dense<0.000000e+00> : vector<16xf32>
    %220 = vector.multi_reduction <add>, %219, %cst_71 [1] : vector<16x32xf32> to vector<16xf32>
    %221 = vector.shape_cast %220 : vector<16xf32> to vector<16x1xf32>
    %cst_72 = arith.constant 3.200000e+01 : f32
    %222 = vector.broadcast %cst_72 : f32 to vector<16x1xf32>
    %223 = arith.divf %221, %222 : vector<16x1xf32>
    %224 = vector.broadcast %216 : vector<16x1xf32> to vector<16x32xf32>
    %225 = arith.subf %212, %224 : vector<16x32xf32>
    %cst_73 = arith.constant 9.99999974E-6 : f32
    %226 = vector.broadcast %cst_73 : f32 to vector<16x1xf32>
    %227 = arith.addf %223, %226 : vector<16x1xf32>
    %228 = math.rsqrt %227 : vector<16x1xf32>
    %229 = vector.broadcast %228 : vector<16x1xf32> to vector<16x32xf32>
    %230 = arith.mulf %225, %229 : vector<16x32xf32>
    %c12 = arith.constant 12 : index
    %c0_74 = arith.constant 0 : index
    %231 = vector.load %arg3[%c12, %c0_74] : memref<24x128xf32, #tpu.memory_space<vmem>>, vector<1x32xf32>
    %232 = vector.broadcast %231 : vector<1x32xf32> to vector<16x32xf32>
    %233 = arith.mulf %230, %232 : vector<16x32xf32>
    %c13 = arith.constant 13 : index
    %c0_75 = arith.constant 0 : index
    %234 = vector.load %arg3[%c13, %c0_75] : memref<24x128xf32, #tpu.memory_space<vmem>>, vector<1x32xf32>
    %235 = vector.broadcast %234 : vector<1x32xf32> to vector<16x32xf32>
    %236 = arith.addf %233, %235 : vector<16x32xf32>
    %c0_76 = arith.constant 0 : index
    %c448 = arith.constant 448 : index
    %237 = vector.load %arg4[%c0_76, %c448] : memref<32x640xbf16, #tpu.memory_space<vmem>>, vector<32x64xbf16>
    %238 = arith.truncf %236 : vector<16x32xf32> to vector<16x32xbf16>
    %cst_77 = arith.constant dense<0.000000e+00> : vector<16x64xf32>
    %239 = tpu.matmul %238, %237, %cst_77 {dimension_numbers = #tpu.dot_dimension_numbers<[1], [0], [0], [1], [0, 0, 1, 1], [], []>} : vector<16x32xbf16>, vector<32x64xbf16>, vector<16x64xf32> -> vector<16x64xf32>
    %c14 = arith.constant 14 : index
    %c0_78 = arith.constant 0 : index
    %240 = vector.load %arg3[%c14, %c0_78] : memref<24x128xf32, #tpu.memory_space<vmem>>, vector<1x64xf32>
    %241 = vector.broadcast %240 : vector<1x64xf32> to vector<16x64xf32>
    %242 = arith.addf %239, %241 : vector<16x64xf32>
    %cst_79 = arith.constant 5.000000e-01 : f32
    %243 = vector.broadcast %cst_79 : f32 to vector<16x64xf32>
    %244 = arith.mulf %243, %242 : vector<16x64xf32>
    %cst_80 = arith.constant 0.707106769 : f32
    %245 = vector.broadcast %cst_80 : f32 to vector<16x64xf32>
    %246 = arith.mulf %242, %245 : vector<16x64xf32>
    %247 = math.erf %246 : vector<16x64xf32>
    %cst_81 = arith.constant 1.000000e+00 : f32
    %248 = vector.broadcast %cst_81 : f32 to vector<16x64xf32>
    %249 = arith.addf %248, %247 : vector<16x64xf32>
    %250 = arith.mulf %244, %249 : vector<16x64xf32>
    %c0_82 = arith.constant 0 : index
    %c32 = arith.constant 32 : index
    %251 = vector.load %arg5[%c0_82, %c32] : memref<64x64xbf16, #tpu.memory_space<vmem>>, vector<64x32xbf16>
    %252 = arith.truncf %250 : vector<16x64xf32> to vector<16x64xbf16>
    %cst_83 = arith.constant dense<0.000000e+00> : vector<16x32xf32>
    %253 = tpu.matmul %252, %251, %cst_83 {dimension_numbers = #tpu.dot_dimension_numbers<[1], [0], [0], [1], [0, 0, 1, 1], [], []>} : vector<16x64xbf16>, vector<64x32xbf16>, vector<16x32xf32> -> vector<16x32xf32>
    %c15 = arith.constant 15 : index
    %c0_84 = arith.constant 0 : index
    %254 = vector.load %arg3[%c15, %c0_84] : memref<24x128xf32, #tpu.memory_space<vmem>>, vector<1x32xf32>
    %255 = vector.broadcast %254 : vector<1x32xf32> to vector<16x32xf32>
    %256 = arith.addf %253, %255 : vector<16x32xf32>
    %257 = arith.addf %236, %256 : vector<16x32xf32>
    %cst_85 = arith.constant dense<0.000000e+00> : vector<16xf32>
    %258 = vector.multi_reduction <add>, %257, %cst_85 [1] : vector<16x32xf32> to vector<16xf32>
    %259 = vector.shape_cast %258 : vector<16xf32> to vector<16x1xf32>
    %cst_86 = arith.constant 3.200000e+01 : f32
    %260 = vector.broadcast %cst_86 : f32 to vector<16x1xf32>
    %261 = arith.divf %259, %260 : vector<16x1xf32>
    %262 = vector.broadcast %261 : vector<16x1xf32> to vector<16x32xf32>
    %263 = arith.subf %257, %262 : vector<16x32xf32>
    %264 = arith.mulf %263, %263 : vector<16x32xf32>
    %cst_87 = arith.constant dense<0.000000e+00> : vector<16xf32>
    %265 = vector.multi_reduction <add>, %264, %cst_87 [1] : vector<16x32xf32> to vector<16xf32>
    %266 = vector.shape_cast %265 : vector<16xf32> to vector<16x1xf32>
    %cst_88 = arith.constant 3.200000e+01 : f32
    %267 = vector.broadcast %cst_88 : f32 to vector<16x1xf32>
    %268 = arith.divf %266, %267 : vector<16x1xf32>
    %269 = vector.broadcast %261 : vector<16x1xf32> to vector<16x32xf32>
    %270 = arith.subf %257, %269 : vector<16x32xf32>
    %cst_89 = arith.constant 9.99999974E-6 : f32
    %271 = vector.broadcast %cst_89 : f32 to vector<16x1xf32>
    %272 = arith.addf %268, %271 : vector<16x1xf32>
    %273 = math.rsqrt %272 : vector<16x1xf32>
    %274 = vector.broadcast %273 : vector<16x1xf32> to vector<16x32xf32>
    %275 = arith.mulf %270, %274 : vector<16x32xf32>
    %c16_90 = arith.constant 16 : index
    %c0_91 = arith.constant 0 : index
    %276 = vector.load %arg3[%c16_90, %c0_91] : memref<24x128xf32, #tpu.memory_space<vmem>>, vector<1x32xf32>
    %277 = vector.broadcast %276 : vector<1x32xf32> to vector<16x32xf32>
    %278 = arith.mulf %275, %277 : vector<16x32xf32>
    %c17 = arith.constant 17 : index
    %c0_92 = arith.constant 0 : index
    %279 = vector.load %arg3[%c17, %c0_92] : memref<24x128xf32, #tpu.memory_space<vmem>>, vector<1x32xf32>
    %280 = vector.broadcast %279 : vector<1x32xf32> to vector<16x32xf32>
    %281 = arith.addf %278, %280 : vector<16x32xf32>
    %c0_93 = arith.constant 0 : index
    %c512 = arith.constant 512 : index
    %282 = vector.load %arg4[%c0_93, %c512] : memref<32x640xbf16, #tpu.memory_space<vmem>>, vector<32x32xbf16>
    %283 = arith.truncf %281 : vector<16x32xf32> to vector<16x32xbf16>
    %cst_94 = arith.constant dense<0.000000e+00> : vector<16x32xf32>
    %284 = tpu.matmul %283, %282, %cst_94 {dimension_numbers = #tpu.dot_dimension_numbers<[1], [0], [0], [1], [0, 0, 1, 1], [], []>} : vector<16x32xbf16>, vector<32x32xbf16>, vector<16x32xf32> -> vector<16x32xf32>
    %c18 = arith.constant 18 : index
    %c0_95 = arith.constant 0 : index
    %285 = vector.load %arg3[%c18, %c0_95] : memref<24x128xf32, #tpu.memory_space<vmem>>, vector<1x32xf32>
    %286 = vector.broadcast %285 : vector<1x32xf32> to vector<16x32xf32>
    %287 = arith.addf %284, %286 : vector<16x32xf32>
    %cst_96 = arith.constant 5.000000e-01 : f32
    %288 = vector.broadcast %cst_96 : f32 to vector<16x32xf32>
    %289 = arith.mulf %288, %287 : vector<16x32xf32>
    %cst_97 = arith.constant 0.707106769 : f32
    %290 = vector.broadcast %cst_97 : f32 to vector<16x32xf32>
    %291 = arith.mulf %287, %290 : vector<16x32xf32>
    %292 = math.erf %291 : vector<16x32xf32>
    %cst_98 = arith.constant 1.000000e+00 : f32
    %293 = vector.broadcast %cst_98 : f32 to vector<16x32xf32>
    %294 = arith.addf %293, %292 : vector<16x32xf32>
    %295 = arith.mulf %289, %294 : vector<16x32xf32>
    %cst_99 = arith.constant dense<0.000000e+00> : vector<16xf32>
    %296 = vector.multi_reduction <add>, %295, %cst_99 [1] : vector<16x32xf32> to vector<16xf32>
    %297 = vector.shape_cast %296 : vector<16xf32> to vector<16x1xf32>
    %cst_100 = arith.constant 3.200000e+01 : f32
    %298 = vector.broadcast %cst_100 : f32 to vector<16x1xf32>
    %299 = arith.divf %297, %298 : vector<16x1xf32>
    %300 = vector.broadcast %299 : vector<16x1xf32> to vector<16x32xf32>
    %301 = arith.subf %295, %300 : vector<16x32xf32>
    %302 = arith.mulf %301, %301 : vector<16x32xf32>
    %cst_101 = arith.constant dense<0.000000e+00> : vector<16xf32>
    %303 = vector.multi_reduction <add>, %302, %cst_101 [1] : vector<16x32xf32> to vector<16xf32>
    %304 = vector.shape_cast %303 : vector<16xf32> to vector<16x1xf32>
    %cst_102 = arith.constant 3.200000e+01 : f32
    %305 = vector.broadcast %cst_102 : f32 to vector<16x1xf32>
    %306 = arith.divf %304, %305 : vector<16x1xf32>
    %307 = vector.broadcast %299 : vector<16x1xf32> to vector<16x32xf32>
    %308 = arith.subf %295, %307 : vector<16x32xf32>
    %cst_103 = arith.constant 9.99999974E-6 : f32
    %309 = vector.broadcast %cst_103 : f32 to vector<16x1xf32>
    %310 = arith.addf %306, %309 : vector<16x1xf32>
    %311 = math.rsqrt %310 : vector<16x1xf32>
    %312 = vector.broadcast %311 : vector<16x1xf32> to vector<16x32xf32>
    %313 = arith.mulf %308, %312 : vector<16x32xf32>
    %c19 = arith.constant 19 : index
    %c0_104 = arith.constant 0 : index
    %314 = vector.load %arg3[%c19, %c0_104] : memref<24x128xf32, #tpu.memory_space<vmem>>, vector<1x32xf32>
    %315 = vector.broadcast %314 : vector<1x32xf32> to vector<16x32xf32>
    %316 = arith.mulf %313, %315 : vector<16x32xf32>
    %c20 = arith.constant 20 : index
    %c0_105 = arith.constant 0 : index
    %317 = vector.load %arg3[%c20, %c0_105] : memref<24x128xf32, #tpu.memory_space<vmem>>, vector<1x32xf32>
    %318 = vector.broadcast %317 : vector<1x32xf32> to vector<16x32xf32>
    %319 = arith.addf %316, %318 : vector<16x32xf32>
    %c0_106 = arith.constant 0 : index
    %c0_107 = arith.constant 0 : index
    %320 = vector.load %arg4[%c0_106, %c0_107] : memref<32x640xbf16, #tpu.memory_space<vmem>>, vector<32x128xbf16>
    %321 = arith.truncf %319 : vector<16x32xf32> to vector<16x32xbf16>
    %cst_108 = arith.constant dense<0.000000e+00> : vector<16x128xf32>
    %322 = tpu.matmul %321, %320, %cst_108 {dimension_numbers = #tpu.dot_dimension_numbers<[1], [0], [0], [1], [0, 0, 1, 1], [], []>} : vector<16x32xbf16>, vector<32x128xbf16>, vector<16x128xf32> -> vector<16x128xf32>
    %c21 = arith.constant 21 : index
    %c0_109 = arith.constant 0 : index
    %323 = vector.load %arg3[%c21, %c0_109] : memref<24x128xf32, #tpu.memory_space<vmem>>, vector<1x128xf32>
    %324 = vector.broadcast %323 : vector<1x128xf32> to vector<16x128xf32>
    %325 = arith.addf %322, %324 : vector<16x128xf32>
    %c0_110 = arith.constant 0 : index
    %c0_111 = arith.constant 0 : index
    %326 = vector.load %arg6[%c0_110, %c0_111] : memref<16x128xf32, #tpu.memory_space<vmem>>, vector<16x128xf32>
    tpu.vector_store %arg6[%c0_110, %c0_111], %325 {strides = array<i32>} : memref<16x128xf32, #tpu.memory_space<vmem>>, vector<16x128xf32>,
    return
  }
  func.func @transform_0(%arg0: i32) -> (i32, i32) {
    %c0_i32 = arith.constant 0 : i32
    %c0_i32_0 = arith.constant 0 : i32
    %c0_i32_1 = arith.constant 0 : i32
    return %c0_i32, %c0_i32_0 : i32, i32
  }
  func.func @transform_1(%arg0: i32) -> (i32, i32) {
    %c0_i32 = arith.constant 0 : i32
    %c0_i32_0 = arith.constant 0 : i32
    %c0_i32_1 = arith.constant 0 : i32
    return %c0_i32, %c0_i32_0 : i32, i32
  }
  func.func @transform_2(%arg0: i32) -> (i32, i32) {
    %c0_i32 = arith.constant 0 : i32
    %c0_i32_0 = arith.constant 0 : i32
    %c0_i32_1 = arith.constant 0 : i32
    return %c0_i32, %c0_i32_0 : i32, i32
  }
  func.func @transform_3(%arg0: i32) -> (i32, i32) {
    %c0_i32 = arith.constant 0 : i32
    %c0_i32_0 = arith.constant 0 : i32
    %c0_i32_1 = arith.constant 0 : i32
    return %c0_i32, %c0_i32_0 : i32, i32
  }
  func.func @transform_4(%arg0: i32) -> (i32, i32) {
    %c0_i32 = arith.constant 0 : i32
    %c0_i32_0 = arith.constant 0 : i32
    %c0_i32_1 = arith.constant 0 : i32
    return %c0_i32, %c0_i32_0 : i32, i32
  }
  func.func @transform_5(%arg0: i32) -> (i32, i32) {
    %c0_i32 = arith.constant 0 : i32
    %c0_i32_0 = arith.constant 0 : i32
    %c0_i32_1 = arith.constant 0 : i32
    return %c0_i32, %c0_i32_0 : i32, i32
  }
}

</mosaic_0001>

<bundles_post_ra>
// kernel: xlm_roberta_forward.1
= control target key start
LH: loop header
LB: loop body
LE: loop exit
PB: predicated region body
PF: predicated region fallthrough
CT: control target
= control target key end

     0   :  { %vm25_vm0 = vcmask 261120   ;;  %v1545_v4 = vmov 32.0   ;;  %s1546_s10 = smov 112   ;;  %s1547_s11 = smov 96   ;;  %vm125_vm8 = vcmask 130048   ;;  %s2009_s0 = inlined_call_operand.vmem [shape: f32[16,32], index: 0, kind: input, shape index: {}]   ;;  %s2010_s2 = inlined_call_operand.vmem [shape: f32[24,128], index: 2, kind: input, shape index: {}]   ;;  %s2011_s3 = inlined_call_operand.vmem [shape: bf16[32,640], index: 3, kind: input, shape index: {}]   ;;  %s2012_s1 = inlined_call_operand.vmem [shape: f32[16,16], index: 1, kind: input, shape index: {}]   ;;  %s2013_s4 = inlined_call_operand.vmem [shape: bf16[64,64], index: 4, kind: input, shape index: {}]   ;;  %s2014_s5 = inlined_call_operand.vmem [shape: f32[16,128], index: 5, kind: output, shape index: {}]  }
   0x1   :  { %v23_v0 = vld [vmem:[%s2009_s0] sm:$0xff]  ;;  %v24_v2 = vld [vmem:[%s2009_s0 + $0x8] sm:$0xff]  ;;  %1475 = vrcp.f32 %v1545_v4  ;;  %v1426_v25 = vld [vmem:[%s2011_s3 + $0x14] sm:$0xf0]  ;;  %s1548_s12 = smov 80   ;;  %s1550_s17 = smov 48  }
   0x2   :  { %v26_v1 = vsel %vm25_vm0, %v23_v0, 0.0  ;;  %v29_v3 = vsel %vm25_vm0, %v24_v2, 0.0  ;;  %v1326_v21 = vld [vmem:[%s2011_s3 + $0x2c] sm:$0xf]  ;;  %v1427_v22 = vld [vmem:[%s2011_s3 + $0x3c] sm:$0xf0] }
   0x3   :  { %27 = vadd.xlane.f32.xlu0 %v26_v1  ;;  %v1602_v23 = vor.u32 %v1427_v22, %v1326_v21  ;;  %v1322_v24 = vld [vmem:[%s2011_s3 + $0x4] sm:$0xf]  ;;  %v1453_v46 = vld [vmem:[%s2010_s2] ss:$0 sm:$0xff]  ;;  %v1454_v51 = vld [vmem:[%s2010_s2 + $0x1] ss:$0 sm:$0xff] }
   0x4   :  { %v1323_v27 = vor.u32 %v1426_v25, %v1322_v24  ;;  %v1455_v57 = vld [vmem:[%s2010_s2 + $0x2] ss:$0 sm:$0xff]  ;;  %s1551_s18 = smov 32  }
   0x5   :  { %113 = vmatpush.bf16.msra.mxu0 %v1602_v23 }
   0x7   :  { %v1476_v5 = vpop.eup %1475 }
   0x8   :  { %v33_v6 = vmul.f32 32.0, %v1476_v5  ;;  %vm37_vm1 = vweird.f32 %v1476_v5 }
   0x9   :  { %114 = vmatpush.bf16.msra.mxu0 %v1323_v27 }
   0xa   :  { %v34_v7 = vsub.f32 1.0, %v33_v6 }
   0xb   :  { %30 = vadd.xlane.f32.xlu0 %v29_v3  ;;  %v1645_v3 = vld [vmem:[%s2012_s1] sm:$0xff] }
   0xc   :  { %v35_v8 = vmul.f32 %v1476_v5, %v34_v7  ;;  %v1652_v7 = vld [vmem:[%s2012_s1 + $0x8] sm:$0xff]  ;;  %s1549_s1 = smov 64  }
   0xe   :  { %v36_v9 = vadd.f32 %v1476_v5, %v35_v8 }
  0x10   :  { %v1590_v10 = vsel %vm37_vm1, %v1476_v5, %v36_v9 }
  0x76   :  { %v28_v11 = vpop.xlane.xlu0 %27 }
  0x77   :  { %v39_v12 = vmul.f32 %v1590_v10, %v28_v11 }
  0x79   :  { %v41_v13 = vsub.f32 %v23_v0, %v39_v12 }
  0x7b   :  { %v43_v14 = vmul.f32 %v41_v13, %v41_v13 }
  0x7d   :  { %v45_v15 = vsel %vm25_vm0, %v43_v14, 0.0 }
  0x7e   :  { %46 = vadd.xlane.f32.xlu1 %v45_v15  ;;  %v31_v16 = vpop.xlane.xlu0 %30 }
  0x7f   :  { %v40_v17 = vmul.f32 %v1590_v10, %v31_v16 }
  0x81   :  { %v42_v18 = vsub.f32 %v24_v2, %v40_v17 }
  0x83   :  { %v44_v19 = vmul.f32 %v42_v18, %v42_v18 }
  0x85   :  { %v48_v20 = vsel %vm25_vm0, %v44_v19, 0.0 }
  0x86   :  { %49 = vadd.xlane.f32.xlu1 %v48_v20 }
  0xf1   :  { %v47_v26 = vpop.xlane.xlu1 %46 }
  0xf2   :  { %v51_v28 = vmul.f32 %v47_v26, %v1590_v10 }
  0xf4   :  { %v53_v29 = vadd.f32 1e-05, %v51_v28 }
  0xf6   :  { %1477 = vrsqrt.f32 %v53_v29  ;;  %vm61_vm3 = vweird.f32 %v53_v29 }
  0xf9   :  { %v50_v30 = vpop.xlane.xlu1 %49 }
  0xfa   :  { %v52_v31 = vmul.f32 %v50_v30, %v1590_v10 }
  0xfc   :  { %v1478_v32 = vpop.eup %1477  ;;  %v54_v33 = vadd.f32 1e-05, %v52_v31 }
  0xfd   :  { %v56_v34 = vmul.f32 %v1478_v32, %v53_v29  ;;  %vm62_vm2 = vweird.f32 %v1478_v32 }
  0xfe   :  { %1479 = vrsqrt.f32 %v54_v33  ;;  %vm63_vm4 = vmor %vm61_vm3, %vm62_vm2  ;;  %vm71_vm6 = vweird.f32 %v54_v33 }
  0xff   :  { %v57_v35 = vmul.f32 %v1478_v32, %v56_v34 }
 0x101   :  { %v58_v36 = vmul.f32 0.5, %v57_v35 }
 0x103   :  { %v59_v37 = vsub.f32 1.5, %v58_v36 }
 0x104   :  { %v1480_v38 = vpop.eup %1479 }
 0x105   :  { %v60_v39 = vmul.f32 %v1478_v32, %v59_v37  ;;  %v66_v40 = vmul.f32 %v1480_v38, %v54_v33  ;;  %vm72_vm5 = vweird.f32 %v1480_v38 }
 0x106   :  { %vm73_vm7 = vmor %vm71_vm6, %vm72_vm5 }
 0x107   :  { %v67_v41 = vmul.f32 %v1480_v38, %v66_v40  ;;  %v64_v42 = vsel %vm63_vm4, %v1478_v32, %v60_v39 }
 0x108   :  { %v75_v45 = vmul.f32 %v64_v42, %v41_v13  ;;  %v1336_v42 = vld [vmem:[%s2011_s3 + $0x4] sm:$0xf] }
 0x109   :  { %v68_v43 = vmul.f32 0.5, %v67_v41 }
 0x10a   :  { %v79_v50 = vmul.f32 %v1453_v46, %v75_v45 }
 0x10b   :  { %v69_v44 = vsub.f32 1.5, %v68_v43  ;;  %v1428_v43 = vld [vmem:[%s2011_s3 + $0x14] sm:$0xf0] }
 0x10c   :  { %v1619_v53 = vadd.f32 %v1454_v51, %v79_v50 }
 0x10d   :  { %v70_v47 = vmul.f32 %v1480_v38, %v69_v44  ;;  %v1337_v44 = vor.u32 %v1428_v43, %v1336_v42 }
 0x10f   :  { %v74_v48 = vsel %vm73_vm7, %v1480_v38, %v70_v47 }
 0x110   :  { %v76_v49 = vmul.f32 %v74_v48, %v42_v18 }
 0x112   :  { %v80_v52 = vmul.f32 %v1453_v46, %v76_v49 }
 0x114   :  { %v1621_v54 = vadd.f32 %v1454_v51, %v80_v52 }
 0x116   :  { %v89_v55 = vpack.c.bf16 %v1621_v54, %v1619_v53 }
 0x118   :  { %1328 = vmatmul.msk.bf16.vlgmr.msra.gmra.mxu0 %vm25_vm0, %v89_v55 }
 0x195   :  { %v116_v56 = vpop.f32.mrf.mxu0 }
 0x196   :  { %v117_v59 = vadd.f32 %v1455_v57, %v116_v56 }
 0x19d   :  { %v118_v58 = vpop.f32.mrf.mxu0 }
 0x19e   :  { %v119_v60 = vadd.f32 %v1455_v57, %v118_v58 }
 0x1a0   :  { %v1629_v61 = vpack.c.bf16 %v119_v60, %v117_v59 }
 0x1a2   :  { %192 = vrot.lane.b32.xlu0 %v1629_v61, %s1546_s10  ;;  %123 = vrot.lane.b32.xlu2 %v1629_v61, %s1547_s11 }
 0x1aa   :  { %194 = vrot.lane.b32.xlu2 %v1629_v61, %s1548_s12 }
 0x1fc   :  { %v124_v62 = vpop.permute.xlu2 %123 }
 0x1fd   :  { %v130_v63 = vsel %vm125_vm8, %v124_v62, 0 }
 0x1fe   :  { %139 = vmatpush.bf16.xpose.msra.mxu1 %v130_v63 }
 0x204   :  { %v195_v0 = vpop.permute.xlu2 %194 }
 0x205   :  { %1329 = vmatmul.msk.bf16.vlgmr.msra.gmra.mxu1 %vm125_vm8, %v1629_v61  ;;  %v200_v1 = vsel %vm125_vm8, %v195_v0, 0 }
 0x206   :  { %209 = vmatpush.bf16.xpose.msra.mxu3 %v200_v1 }
 0x214   :  { %v193_v2 = vpop.permute.xlu0 %192 }
 0x215   :  { %1331 = vmatmul.msk.bf16.vlgmr.msra.gmra.mxu3 %vm125_vm8, %v193_v2 }
 0x282   :  { %v141_v4 = vpop.f32.mrf.mxu1 }
 0x283   :  { %v142_v5 = vadd.f32 %v141_v4, %v1645_v3 }
 0x285   :  { %v146_v6 = vsel %vm125_vm8, %v142_v5, -inf }
 0x286   :  { %147 = vmax.xlane.f32.xlu1 %v146_v6 }
 0x28a   :  { %v143_v8 = vpop.f32.mrf.mxu1 }
 0x28b   :  { %v144_v9 = vadd.f32 %v143_v8, %v1652_v7  ;;  %v1456_v8 = vld [vmem:[%s2010_s2 + $0x3] ss:$0 sm:$0xff] }
 0x28d   :  { %v149_v11 = vsel %vm125_vm8, %v144_v9, -inf }
 0x28e   :  { %150 = vmax.xlane.f32.xlu2 %v149_v11 }
 0x298   :  { %v211_v12 = vpop.f32.mrf.mxu3 }
 0x299   :  { %v212_v13 = vadd.f32 %v211_v12, %v1645_v3 }
 0x29b   :  { %v216_v14 = vsel %vm125_vm8, %v212_v13, -inf }
 0x29c   :  { %217 = vmax.xlane.f32.xlu1 %v216_v14 }
 0x2a0   :  { %v213_v15 = vpop.f32.mrf.mxu3 }
 0x2a1   :  { %v214_v16 = vadd.f32 %v213_v15, %v1652_v7 }
 0x2a3   :  { %v219_v17 = vsel %vm125_vm8, %v214_v16, -inf }
 0x2a4   :  { %220 = vmax.xlane.f32.xlu1 %v219_v17 }
 0x2bd   :  { %169 = vrot.lane.b32.xlu1 %v1629_v61, %s1549_s1 }
 0x2f9   :  { %v148_v18 = vpop.xlane.xlu1 %147 }
 0x2fa   :  { %v152_v19 = vsub.f32 %v142_v5, %v148_v18 }
 0x2fc   :  { %v154_v20 = vmul.f32 1.442695, %v152_v19 }
 0x2fe   :  { %1481 = vpow2.f32 %v154_v20 }
 0x301   :  { %v151_v21 = vpop.xlane.xlu2 %150 }
 0x302   :  { %v153_v22 = vsub.f32 %v144_v9, %v151_v21 }
 0x304   :  { %v1482_v24 = vpop.eup %1481  ;;  %v156_v25 = vmul.f32 1.442695, %v153_v22 }
 0x305   :  { %v158_v26 = vsel %vm125_vm8, %v1482_v24, 0.0 }
 0x306   :  { %1483 = vpow2.f32 %v156_v25  ;;  %159 = vadd.xlane.f32.xlu0 %v158_v26 }
 0x30c   :  { %v1484_v27 = vpop.eup %1483 }
 0x30d   :  { %v161_v28 = vsel %vm125_vm8, %v1484_v27, 0.0 }
 0x30e   :  { %162 = vadd.xlane.f32.xlu1 %v161_v28 }
 0x30f   :  { %v218_v29 = vpop.xlane.xlu1 %217 }
 0x310   :  { %v222_v30 = vsub.f32 %v212_v13, %v218_v29  ;;  %v1430_v29 = vld [vmem:[%s2011_s3 + $0x40] sm:$0xf0] }
 0x312   :  { %v224_v31 = vmul.f32 1.442695, %v222_v30 }
 0x314   :  { %1485 = vpow2.f32 %v224_v31  ;;  %v1341_v31 = vld [vmem:[%s2011_s3 + $0x8] sm:$0xf] }
 0x317   :  { %v221_v32 = vpop.xlane.xlu1 %220 }
 0x318   :  { %v223_v33 = vsub.f32 %v214_v16, %v221_v32  ;;  %v1429_v32 = vld [vmem:[%s2011_s3 + $0x18] sm:$0xf0] }
 0x31a   :  { %v1486_v34 = vpop.eup %1485  ;;  %v226_v35 = vmul.f32 1.442695, %v223_v33  ;;  %285 = vrot.lane.b32.xlu0 %v1337_v44, %s1551_s18 }
 0x31b   :  { %v228_v36 = vsel %vm125_vm8, %v1486_v34, 0.0 }
 0x31c   :  { %1487 = vpow2.f32 %v226_v35  ;;  %229 = vadd.xlane.f32.xlu2 %v228_v36 }
 0x322   :  { %v1488_v37 = vpop.eup %1487 }
 0x323   :  { %v231_v38 = vsel %vm125_vm8, %v1488_v37, 0.0 }
 0x324   :  { %232 = vadd.xlane.f32.xlu2 %v231_v38 }
 0x327   :  { %239 = vrot.lane.b32.xlu1 %v1629_v61, %s1550_s17 }
 0x32f   :  { %v170_v39 = vpop.permute.xlu1 %169 }
 0x330   :  { %182 = vmatpush.bf16.msra.mxu2 %v170_v39 }
 0x33c   :  { %260 = vrot.lane.b32.xlu2 %v1602_v23, %s1551_s18 }
 0x379   :  { %v160_v40 = vpop.xlane.xlu0 %159 }
 0x37a   :  { %1489 = vrcp.f32 %v160_v40 }
 0x380   :  { %v1490_v45 = vpop.eup %1489 }
 0x381   :  { %v163_v41 = vpop.xlane.xlu1 %162  ;;  %v166_v47 = vmul.f32 %v1490_v45, %v1482_v24 }
 0x382   :  { %1491 = vrcp.f32 %v163_v41 }
 0x388   :  { %v1492_v46 = vpop.eup %1491 }
 0x389   :  { %v167_v48 = vmul.f32 %v1492_v46, %v1484_v27 }
 0x38b   :  { %v168_v49 = vpack.c.bf16 %v167_v48, %v166_v47 }
 0x38c   :  { %v286_v59 = vpop.permute.xlu0 %285 }
 0x38d   :  { %1330 = vmatmul.msk.bf16.vlgmr.msra.gmra.mxu2 %vm125_vm8, %v168_v49  ;;  %298 = vmatpush.bf16.msrb.mxu1 %v286_v59  ;;  %v1458_v59 = vld [vmem:[%s2010_s2 + $0x5] ss:$0 sm:$0xff] }
 0x38f   :  { %v230_v23 = vpop.xlane.xlu2 %229 }
 0x390   :  { %1493 = vrcp.f32 %v230_v23 }
 0x396   :  { %v1494_v52 = vpop.eup %1493 }
 0x397   :  { %v233_v50 = vpop.xlane.xlu2 %232  ;;  %v236_v56 = vmul.f32 %v1494_v52, %v1486_v34  ;;  %v1342_v34 = vor.u32 %v1429_v32, %v1341_v31  ;;  %v1457_v52 = vld [vmem:[%s2010_s2 + $0x4] ss:$0 sm:$0xff] }
 0x398   :  { %1495 = vrcp.f32 %v233_v50 }
 0x399   :  { %v240_v51 = vpop.permute.xlu1 %239 }
 0x39a   :  { %252 = vmatpush.bf16.msrb.mxu2 %v240_v51 }
 0x39e   :  { %v1496_v55 = vpop.eup %1495 }
 0x39f   :  { %v237_v57 = vmul.f32 %v1496_v55, %v1488_v37  ;;  %v261_v60 = vpop.permute.xlu2 %260 }
 0x3a0   :  { %273 = vmatpush.bf16.msrb.mxu0 %v261_v60 }
 0x3a1   :  { %v238_v58 = vpack.c.bf16 %v237_v57, %v236_v56 }
 0x3a3   :  { %1332 = vmatmul.msk.bf16.vlgmr.msrb.gmra.mxu2 %vm125_vm8, %v238_v58 }
 0x410   :  { %v184_v61 = vpop.f32.mrf.mxu2 }
 0x418   :  { %v186_v62 = vpop.f32.mrf.mxu2 }
 0x419   :  { %v191_v63 = vpack.c.bf16 %v186_v62, %v184_v61 }
 0x41b   :  { %1338 = vmatmul.msk.bf16.vlgmr.msrb.gmra.mxu1 %vm125_vm8, %v191_v63 }
 0x426   :  { %v254_v0 = vpop.f32.mrf.mxu2 }
 0x42e   :  { %v256_v1 = vpop.f32.mrf.mxu2 }
 0x42f   :  { %v259_v2 = vpack.c.bf16 %v256_v1, %v254_v0  ;;  %v1459_v0 = vld [vmem:[%s2010_s2 + $0x6] ss:$0 sm:$0xff] }
 0x431   :  { %1333 = vmatmul.msk.bf16.vlgmr.msrb.gmra.mxu0 %vm125_vm8, %v259_v2 }
 0x498   :  { %v300_v4 = vpop.f32.mrf.mxu1 }
 0x4a0   :  { %v302_v13 = vpop.f32.mrf.mxu1 }
 0x4ae   :  { %v275_v5 = vpop.f32.mrf.mxu0 }
 0x4af   :  { %v301_v6 = vadd.f32 %v300_v4, %v275_v5 }
 0x4b1   :  { %v305_v9 = vadd.f32 %v301_v6, %v1619_v53 }
 0x4b3   :  { %v309_v11 = vadd.f32 %v1456_v8, %v305_v9 }
 0x4b5   :  { %v311_v12 = vsel %vm25_vm0, %v309_v11, 0.0 }
 0x4b6   :  { %312 = vadd.xlane.f32.xlu1 %v311_v12  ;;  %v277_v14 = vpop.f32.mrf.mxu0 }
 0x4b7   :  { %v303_v15 = vadd.f32 %v302_v13, %v277_v14 }
 0x4b9   :  { %v306_v16 = vadd.f32 %v303_v15, %v1621_v54  ;;  %v1345_v54 = vld [vmem:[%s2011_s3 + $0x30] sm:$0xf] }
 0x4ba   :  { %v1346_v30 = vor.u32 %v1430_v29, %v1345_v54  ;;  %v1743_v29 = vld [vmem:[%s2013_s4 + $0x10] sm:$0xff] }
 0x4bb   :  { %v310_v17 = vadd.f32 %v1456_v8, %v306_v16 }
 0x4bc   :  { %391 = vmatpush.bf16.msrb.mxu3 %v1346_v30 }
 0x4bd   :  { %v314_v18 = vsel %vm25_vm0, %v310_v17, 0.0 }
 0x4be   :  { %315 = vadd.xlane.f32.xlu2 %v314_v18 }
 0x4c0   :  { %392 = vmatpush.bf16.msrb.mxu3 %v1342_v34 }
 0x529   :  { %v313_v19 = vpop.xlane.xlu1 %312 }
 0x52a   :  { %v317_v20 = vmul.f32 %v313_v19, %v1590_v10 }
 0x52c   :  { %v319_v21 = vsub.f32 %v309_v11, %v317_v20 }
 0x52e   :  { %v321_v22 = vmul.f32 %v319_v21, %v319_v21 }
 0x530   :  { %v323_v53 = vsel %vm25_vm0, %v321_v22, 0.0  ;;  %v1737_v22 = vld [vmem:[%s2013_s4 + $0x18] sm:$0xff] }
 0x531   :  { %324 = vadd.xlane.f32.xlu0 %v323_v53  ;;  %v316_v24 = vpop.xlane.xlu2 %315  ;;  %530 = vmatpush.bf16.msra.mxu2 %v1737_v22 }
 0x532   :  { %v318_v25 = vmul.f32 %v316_v24, %v1590_v10 }
 0x534   :  { %v320_v26 = vsub.f32 %v310_v17, %v318_v25 }
 0x535   :  { %531 = vmatpush.bf16.msra.mxu2 %v1743_v29 }
 0x536   :  { %v322_v27 = vmul.f32 %v320_v26, %v320_v26 }
 0x538   :  { %v326_v28 = vsel %vm25_vm0, %v322_v27, 0.0 }
 0x539   :  { %327 = vadd.xlane.f32.xlu1 %v326_v28 }
 0x5a4   :  { %v325_v33 = vpop.xlane.xlu0 %324 }
 0x5a5   :  { %v329_v35 = vmul.f32 %v325_v33, %v1590_v10 }
 0x5a7   :  { %v331_v36 = vadd.f32 1e-05, %v329_v35 }
 0x5a9   :  { %1497 = vrsqrt.f32 %v331_v36  ;;  %vm339_vm10 = vweird.f32 %v331_v36 }
 0x5ac   :  { %v328_v37 = vpop.xlane.xlu1 %327 }
 0x5ad   :  { %v330_v38 = vmul.f32 %v328_v37, %v1590_v10  ;;  %v1749_v37 = vld [vmem:[%s2013_s4 + $0x8] sm:$0xff] }
 0x5ae   :  { %532 = vmatpush.bf16.msra.mxu2 %v1749_v37 }
 0x5af   :  { %v1498_v39 = vpop.eup %1497  ;;  %v332_v40 = vadd.f32 1e-05, %v330_v38 }
 0x5b0   :  { %v334_v41 = vmul.f32 %v1498_v39, %v331_v36  ;;  %vm340_vm9 = vweird.f32 %v1498_v39 }
 0x5b1   :  { %1499 = vrsqrt.f32 %v332_v40  ;;  %vm341_vm11 = vmor %vm339_vm10, %vm340_vm9  ;;  %vm349_vm13 = vweird.f32 %v332_v40  ;;  %vm522_vm9 = vcmask 523264  }
 0x5b2   :  { %v335_v42 = vmul.f32 %v1498_v39, %v334_v41 }
 0x5b4   :  { %v336_v43 = vmul.f32 0.5, %v335_v42 }
 0x5b6   :  { %v337_v44 = vsub.f32 1.5, %v336_v43  ;;  %v1755_v43 = vld [vmem:[%s2013_s4] sm:$0xff] }
 0x5b7   :  { %v1500_v45 = vpop.eup %1499  ;;  %533 = vmatpush.bf16.msra.mxu2 %v1755_v43 }
 0x5b8   :  { %v338_v46 = vmul.f32 %v1498_v39, %v337_v44  ;;  %v344_v47 = vmul.f32 %v1500_v45, %v332_v40  ;;  %vm350_vm12 = vweird.f32 %v1500_v45 }
 0x5b9   :  { %vm351_vm14 = vmor %vm349_vm13, %vm350_vm12 }
 0x5ba   :  { %v345_v48 = vmul.f32 %v1500_v45, %v344_v47  ;;  %v342_v49 = vsel %vm341_vm11, %v1498_v39, %v338_v46 }
 0x5bb   :  { %v353_v51 = vmul.f32 %v342_v49, %v319_v21 }
 0x5bc   :  { %v346_v23 = vmul.f32 0.5, %v345_v48 }
 0x5bd   :  { %v357_v58 = vmul.f32 %v1457_v52, %v353_v51 }
 0x5be   :  { %v347_v50 = vsub.f32 1.5, %v346_v23 }
 0x5bf   :  { %v1710_v61 = vadd.f32 %v1458_v59, %v357_v58 }
 0x5c0   :  { %v348_v55 = vmul.f32 %v1500_v45, %v347_v50 }
 0x5c2   :  { %v352_v56 = vsel %vm351_vm14, %v1500_v45, %v348_v55 }
 0x5c3   :  { %v354_v57 = vmul.f32 %v352_v56, %v320_v26 }
 0x5c5   :  { %v358_v60 = vmul.f32 %v1457_v52, %v354_v57 }
 0x5c7   :  { %v1712_v62 = vadd.f32 %v1458_v59, %v358_v60 }
 0x5c9   :  { %v367_v63 = vpack.c.bf16 %v1712_v62, %v1710_v61 }
 0x5cb   :  { %1347 = vmatmul.msk.bf16.vlgmr.msrb.gmra.mxu3 %vm25_vm0, %v367_v63 }
 0x64e   :  { %v394_v1 = vpop.f32.mrf.mxu3 }
 0x64f   :  { %v1720_v2 = vadd.f32 %v1459_v0, %v394_v1 }
 0x651   :  { %v1723_v4 = vmul.f32 0.70710677, %v1720_v2 }
 0x653   :  { %v403_v5 = vmul.f32 %v1723_v4, %v1723_v4 }
 0x655   :  { %v404_v6 = vmin.f32 %v403_v5, 16.0 }
 0x656   :  { %v396_v8 = vpop.f32.mrf.mxu3 }
 0x657   :  { %v405_v9 = vmul.f32 2.1237322e-06, %v404_v6  ;;  %v416_v11 = vmul.f32 3.8918573e-05, %v404_v6  ;;  %v1727_v12 = vadd.f32 %v1459_v0, %v396_v8 }
 0x659   :  { %v406_v13 = vadd.f32 0.00028619796, %v405_v9  ;;  %v417_v14 = vadd.f32 0.001143296, %v416_v11  ;;  %v1730_v15 = vmul.f32 0.70710677, %v1727_v12 }
 0x65b   :  { %v418_v16 = vmul.f32 %v417_v14, %v404_v6  ;;  %v443_v17 = vmul.f32 %v1730_v15, %v1730_v15  ;;  %v407_v18 = vmul.f32 %v406_v13, %v404_v6 }
 0x65d   :  { %v419_v19 = vadd.f32 0.014752088, %v418_v16  ;;  %v444_v20 = vmin.f32 %v443_v17, 16.0  ;;  %v408_v25 = vadd.f32 0.0036580483, %v407_v18 }
 0x65f   :  { %v420_v21 = vmul.f32 %v419_v19, %v404_v6  ;;  %v445_v53 = vmul.f32 2.1237322e-06, %v444_v20  ;;  %v456_v24 = vmul.f32 3.8918573e-05, %v444_v20  ;;  %v409_v32 = vmul.f32 %v408_v25, %v404_v6 }
 0x661   :  { %v421_v26 = vadd.f32 0.112945676, %v420_v21  ;;  %v446_v27 = vadd.f32 0.00028619796, %v445_v53  ;;  %v457_v28 = vadd.f32 0.001143296, %v456_v24 }
 0x662   :  { %v410_v39 = vadd.f32 0.05243302, %v409_v32 }
 0x663   :  { %v422_v54 = vmul.f32 %v421_v26, %v404_v6  ;;  %v447_v30 = vmul.f32 %v446_v27, %v444_v20  ;;  %v458_v31 = vmul.f32 %v457_v28, %v444_v20 }
 0x664   :  { %v411_v45 = vmul.f32 %v410_v39, %v404_v6 }
 0x665   :  { %v423_v33 = vadd.f32 0.4994258, %v422_v54  ;;  %v448_v34 = vadd.f32 0.0036580483, %v447_v30  ;;  %v459_v35 = vadd.f32 0.014752088, %v458_v31 }
 0x666   :  { %v412_v23 = vadd.f32 0.18741608, %v411_v45  ;;  %v399_v30 = vmul.f32 0.5, %v1720_v2  ;;  %v400_v31 = vmul.f32 0.5, %v1727_v12  ;;  %v1460_v2 = vld [vmem:[%s2010_s2 + $0x7] ss:$0 sm:$0xff] }
 0x667   :  { %v424_v36 = vmul.f32 %v423_v33, %v404_v6  ;;  %v460_v38 = vmul.f32 %v459_v35, %v444_v20  ;;  %v449_v41 = vmul.f32 %v448_v34, %v444_v20 }
 0x668   :  { %v413_v56 = vmul.f32 %v412_v23, %v404_v6  ;;  %v1377_v23 = vld [vmem:[%s2011_s3 + $0x30] sm:$0xf] }
 0x669   :  { %v425_v40 = vadd.f32 1.0, %v424_v36  ;;  %v461_v42 = vadd.f32 0.112945676, %v460_v38  ;;  %v450_v46 = vadd.f32 0.05243302, %v449_v41 }
 0x66a   :  { %v414_v0 = vadd.f32 1.1283791, %v413_v56  ;;  %v1436_v36 = vld [vmem:[%s2011_s3 + $0x18] sm:$0xf0] }
 0x66b   :  { %1501 = vrcp.f32 %v425_v40  ;;  %v462_v44 = vmul.f32 %v461_v42, %v444_v20  ;;  %v451_v51 = vmul.f32 %v450_v46, %v444_v20  ;;  %v437_v58 = vand.u32 2147483648, %v425_v40 }
 0x66c   :  { %v435_v60 = vand.u32 2147483647, %v425_v40  ;;  %vm431_vm1 = vweird.f32 %v425_v40  ;;  %v415_v14 = vmul.f32 %v414_v0, %v1723_v4  ;;  %v1435_v0 = vld [vmem:[%s2011_s3 + $0xc] sm:$0xf] }
 0x66d   :  { %v463_v47 = vadd.f32 0.4994258, %v462_v44  ;;  %v452_v59 = vadd.f32 0.18741608, %v451_v51  ;;  %v438_v8 = vor.u32 1.1754944e-38, %v437_v58 }
 0x66e   :  { %vm436_vm3 = vcmp.eq.f32.partialorder %v435_v60, 8.507059e+37  ;;  %v1379_v60 = vld [vmem:[%s2011_s3 + $0x44] sm:$0xf0] }
 0x66f   :  { %v464_v48 = vmul.f32 %v463_v47, %v444_v20  ;;  %v453_v9 = vmul.f32 %v452_v59, %v444_v20  ;;  %v1437_v59 = vld [vmem:[%s2011_s3 + $0x34] sm:$0xf] }
 0x671   :  { %v1502_v49 = vpop.eup %1501  ;;  %v465_v52 = vadd.f32 1.0, %v464_v48  ;;  %v454_v6 = vadd.f32 1.1283791, %v453_v9 }
 0x672   :  { %v427_v50 = vmul.f32 %v1502_v49, %v425_v40  ;;  %vm432_vm15 = vweird.f32 %v1502_v49 }
 0x673   :  { %1503 = vrcp.f32 %v465_v52  ;;  %vm433_vm2 = vmor %vm431_vm1, %vm432_vm15  ;;  %v477_v17 = vand.u32 2147483648, %v465_v52  ;;  %v475_v21 = vand.u32 2147483647, %v465_v52  ;;  %vm471_vm5 = vweird.f32 %v465_v52 }
 0x674   :  { %v428_v55 = vsub.f32 1.0, %v427_v50  ;;  %v455_v26 = vmul.f32 %v454_v6, %v1730_v15  ;;  %v1369_v15 = vld [vmem:[%s2011_s3 + $0x8] sm:$0xf] }
 0x675   :  { %v478_v24 = vor.u32 1.1754944e-38, %v477_v17  ;;  %vm476_vm7 = vcmp.eq.f32.partialorder %v475_v21, 8.507059e+37  ;;  %v1370_v38 = vor.u32 %v1436_v36, %v1369_v15 }
 0x676   :  { %v429_v57 = vmul.f32 %v1502_v49, %v428_v55 }
 0x677   :  { %617 = vrot.lane.b32.xlu0 %v1370_v38, %s1549_s1  ;;  %v1462_v38 = vld [vmem:[%s2010_s2 + $0x9] ss:$0 sm:$0xff] }
 0x678   :  { %v430_v63 = vadd.f32 %v1502_v49, %v429_v57 }
 0x679   :  { %v1504_v1 = vpop.eup %1503 }
 0x67a   :  { %v434_v5 = vsel %vm433_vm2, %v1502_v49, %v430_v63  ;;  %v467_v11 = vmul.f32 %v1504_v1, %v465_v52  ;;  %vm472_vm4 = vweird.f32 %v1504_v1  ;;  %v1382_v63 = vor.u32 %v1437_v59, %v1379_v60 }
 0x67b   :  { %v439_v13 = vsel %vm436_vm3, %v438_v8, %v434_v5  ;;  %vm473_vm6 = vmor %vm471_vm5, %vm472_vm4 }
 0x67c   :  { %v468_v16 = vsub.f32 1.0, %v467_v11  ;;  %v440_v18 = vmul.f32 %v439_v13, %v415_v14 }
 0x67e   :  { %v469_v19 = vmul.f32 %v1504_v1, %v468_v16  ;;  %v1348_v25 = vclamps-f32 %v440_v18, 1.0 }
 0x680   :  { %v470_v53 = vadd.f32 %v1504_v1, %v469_v19  ;;  %v483_v54 = vadd.f32 1.0, %v1348_v25 }
 0x682   :  { %v474_v20 = vsel %vm473_vm6, %v1504_v1, %v470_v53  ;;  %v485_v33 = vmul.f32 %v483_v54, %v399_v30  ;;  %v1371_v1 = vld [vmem:[%s2011_s3 + $0x1c] sm:$0xf0] }
 0x683   :  { %v479_v27 = vsel %vm476_vm7, %v478_v24, %v474_v20  ;;  %v1374_v5 = vor.u32 %v1435_v0, %v1371_v1 }
 0x684   :  { %v480_v28 = vmul.f32 %v479_v27, %v455_v26 }
 0x686   :  { %v1349_v4 = vclamps-f32 %v480_v28, 1.0 }
 0x688   :  { %v484_v32 = vadd.f32 1.0, %v1349_v4 }
 0x68a   :  { %v486_v34 = vmul.f32 %v484_v32, %v400_v31  ;;  %v1461_v32 = vld [vmem:[%s2010_s2 + $0x8] ss:$0 sm:$0xff] }
 0x68c   :  { %v495_v35 = vpack.c.bf16 %v486_v34, %v485_v33 }
 0x68e   :  { %1366 = vmatmul.msk.bf16.vlgmr.msra.gmra.mxu2 %vm522_vm9, %v495_v35 }
 0x6e9   :  { %v618_v8 = vpop.permute.xlu0 %617 }
 0x711   :  { %v535_v12 = vpop.f32.mrf.mxu2 }
 0x712   :  { %v536_v39 = vadd.f32 %v1460_v2, %v535_v12 }
 0x714   :  { %v540_v40 = vadd.f32 %v536_v39, %v1710_v61  ;;  %v1438_v61 = vld [vmem:[%s2011_s3 + $0x40] sm:$0xf0] }
 0x715   :  { %v1378_v51 = vor.u32 %v1438_v61, %v1377_v23 }
 0x716   :  { %v542_v41 = vsel %vm25_vm0, %v540_v40, 0.0 }
 0x717   :  { %543 = vadd.xlane.f32.xlu1 %v542_v41 }
 0x719   :  { %v537_v42 = vpop.f32.mrf.mxu2 }
 0x71a   :  { %v538_v44 = vadd.f32 %v1460_v2, %v537_v42 }
 0x71c   :  { %v541_v45 = vadd.f32 %v538_v44, %v1712_v62 }
 0x71e   :  { %v545_v46 = vsel %vm25_vm0, %v541_v45, 0.0 }
 0x71f   :  { %546 = vadd.xlane.f32.xlu2 %v545_v46 }
 0x737   :  { %621 = vrot.lane.b32.xlu2 %v1378_v51, %s1549_s1 }
 0x78a   :  { %v544_v47 = vpop.xlane.xlu1 %543 }
 0x78b   :  { %v548_v48 = vmul.f32 %v544_v47, %v1590_v10 }
 0x78d   :  { %v550_v49 = vsub.f32 %v540_v40, %v548_v48 }
 0x78f   :  { %v552_v50 = vmul.f32 %v550_v49, %v550_v49 }
 0x791   :  { %v554_v52 = vsel %vm25_vm0, %v552_v50, 0.0 }
 0x792   :  { %v547_v62 = vpop.xlane.xlu2 %546  ;;  %555 = vadd.xlane.f32.xlu1 %v554_v52 }
 0x793   :  { %v549_v55 = vmul.f32 %v547_v62, %v1590_v10 }
 0x795   :  { %v551_v56 = vsub.f32 %v541_v45, %v549_v55  ;;  %v1463_v45 = vld [vmem:[%s2010_s2 + $0xa] ss:$0 sm:$0xff] }
 0x797   :  { %v553_v57 = vmul.f32 %v551_v56, %v551_v56 }
 0x799   :  { %v557_v58 = vsel %vm25_vm0, %v553_v57, 0.0 }
 0x79a   :  { %558 = vadd.xlane.f32.xlu0 %v557_v58  ;;  %v622_v27 = vpop.permute.xlu2 %621 }
 0x7ab   :  { %623 = vrot.lane.b32.xlu1 %v1382_v63, %s1549_s1 }
 0x7ae   :  { %619 = vrot.lane.b32.xlu0 %v1374_v5, %s1549_s1 }
 0x805   :  { %v556_v9 = vpop.xlane.xlu1 %555 }
 0x806   :  { %v560_v11 = vmul.f32 %v556_v9, %v1590_v10 }
 0x808   :  { %v562_v13 = vadd.f32 1e-05, %v560_v11 }
 0x80a   :  { %1505 = vrsqrt.f32 %v562_v13  ;;  %vm570_vm11 = vweird.f32 %v562_v13 }
 0x80d   :  { %v559_v14 = vpop.xlane.xlu0 %558 }
 0x80e   :  { %v561_v16 = vmul.f32 %v559_v14, %v1590_v10 }
 0x810   :  { %v1506_v6 = vpop.eup %1505  ;;  %v563_v17 = vadd.f32 1e-05, %v561_v16 }
 0x811   :  { %v565_v18 = vmul.f32 %v1506_v6, %v562_v13  ;;  %vm571_vm10 = vweird.f32 %v1506_v6 }
 0x812   :  { %1507 = vrsqrt.f32 %v563_v17  ;;  %vm572_vm12 = vmor %vm570_vm11, %vm571_vm10  ;;  %vm580_vm14 = vweird.f32 %v563_v17 }
 0x813   :  { %v566_v19 = vmul.f32 %v1506_v6, %v565_v18 }
 0x815   :  { %v567_v21 = vmul.f32 0.5, %v566_v19 }
 0x817   :  { %v568_v53 = vsub.f32 1.5, %v567_v21 }
 0x818   :  { %v1508_v24 = vpop.eup %1507 }
 0x819   :  { %v569_v25 = vmul.f32 %v1506_v6, %v568_v53  ;;  %v575_v26 = vmul.f32 %v1508_v24, %v563_v17  ;;  %vm581_vm13 = vweird.f32 %v1508_v24 }
 0x81a   :  { %vm582_vm15 = vmor %vm580_vm14, %vm581_vm13 }
 0x81b   :  { %v576_v20 = vmul.f32 %v1508_v24, %v575_v26  ;;  %v573_v28 = vsel %vm572_vm12, %v1506_v6, %v569_v25 }
 0x81c   :  { %v584_v33 = vmul.f32 %v573_v28, %v550_v49 }
 0x81d   :  { %v577_v54 = vmul.f32 0.5, %v576_v20  ;;  %v624_v4 = vpop.permute.xlu1 %623 }
 0x81e   :  { %v627_v30 = vsel %vm522_vm9, %v622_v27, %v624_v4  ;;  %v588_v2 = vmul.f32 %v1461_v32, %v584_v33  ;;  %v1439_v33 = vld [vmem:[%s2011_s3 + $0x1c] sm:$0xf0] }
 0x81f   :  { %v578_v31 = vsub.f32 1.5, %v577_v54  ;;  %639 = vmatpush.bf16.msra.mxu0 %v627_v30 }
 0x820   :  { %v620_v34 = vpop.permute.xlu0 %619  ;;  %v1812_v40 = vadd.f32 %v1462_v38, %v588_v2 }
 0x821   :  { %v579_v35 = vmul.f32 %v1508_v24, %v578_v31  ;;  %v626_v15 = vsel %vm522_vm9, %v618_v8, %v620_v34 }
 0x823   :  { %v583_v36 = vsel %vm582_vm15, %v1508_v24, %v579_v35  ;;  %640 = vmatpush.bf16.msra.mxu0 %v626_v15 }
 0x824   :  { %v585_v12 = vmul.f32 %v583_v36, %v551_v56 }
 0x826   :  { %v589_v39 = vmul.f32 %v1461_v32, %v585_v12  ;;  %v1395_v32 = vld [vmem:[%s2011_s3 + $0xc] sm:$0xf]  ;;  %v1390_v12 = vld [vmem:[%s2011_s3 + $0x34] sm:$0xf] }
 0x827   :  { %v1396_v34 = vor.u32 %v1439_v33, %v1395_v32 }
 0x828   :  { %v1814_v41 = vadd.f32 %v1462_v38, %v589_v39  ;;  %v1440_v39 = vld [vmem:[%s2011_s3 + $0x44] sm:$0xf0] }
 0x82a   :  { %v598_v42 = vpack.c.bf16 %v1814_v41, %v1812_v40 }
 0x82c   :  { %1383 = vmatmul.msk.bf16.vlgmr.msra.gmra.mxu0 %vm25_vm0, %v598_v42  ;;  %v1391_v42 = vor.u32 %v1440_v39, %v1390_v12 }
 0x8a9   :  { %v642_v44 = vpop.f32.mrf.mxu0 }
 0x8aa   :  { %v643_v47 = vadd.f32 %v1463_v45, %v642_v44 }
 0x8b1   :  { %v644_v46 = vpop.f32.mrf.mxu0 }
 0x8b2   :  { %v645_v48 = vadd.f32 %v1463_v45, %v644_v46 }
 0x8b4   :  { %v647_v49 = vpack.c.bf16 %v645_v48, %v643_v47 }
 0x8b6   :  { %717 = vrot.lane.b32.xlu0 %v647_v49, %s1546_s10  ;;  %719 = vrot.lane.b32.xlu1 %v647_v49, %s1548_s12 }
 0x8b7   :  { %649 = vrot.lane.b32.xlu2 %v647_v49, %s1547_s11 }
 0x911   :  { %v650_v23 = vpop.permute.xlu2 %649 }
 0x912   :  { %v655_v61 = vsel %vm125_vm8, %v650_v23, 0 }
 0x913   :  { %664 = vmatpush.bf16.xpose.msra.mxu1 %v655_v61 }
 0x91a   :  { %1384 = vmatmul.msk.bf16.vlgmr.msra.gmra.mxu1 %vm125_vm8, %v647_v49 }
 0x928   :  { %v720_v50 = vpop.permute.xlu1 %719  ;;  %v718_v52 = vpop.permute.xlu0 %717 }
 0x929   :  { %v725_v51 = vsel %vm125_vm8, %v720_v50, 0 }
 0x92a   :  { %734 = vmatpush.bf16.xpose.msrb.mxu2 %v725_v51 }
 0x931   :  { %1386 = vmatmul.msk.bf16.vlgmr.msrb.gmra.mxu2 %vm125_vm8, %v718_v52 }
 0x997   :  { %v666_v62 = vpop.f32.mrf.mxu1 }
 0x998   :  { %v667_v55 = vadd.f32 %v666_v62, %v1645_v3 }
 0x99a   :  { %v671_v56 = vsel %vm125_vm8, %v667_v55, -inf }
 0x99b   :  { %672 = vmax.xlane.f32.xlu2 %v671_v56 }
 0x99f   :  { %v668_v57 = vpop.f32.mrf.mxu1 }
 0x9a0   :  { %v669_v58 = vadd.f32 %v668_v57, %v1652_v7 }
 0x9a2   :  { %v674_v59 = vsel %vm125_vm8, %v669_v58, -inf }
 0x9a3   :  { %675 = vmax.xlane.f32.xlu1 %v674_v59 }
 0x9b4   :  { %v736_v60 = vpop.f32.mrf.mxu2 }
 0x9b5   :  { %v737_v63 = vadd.f32 %v736_v60, %v1645_v3 }
 0x9b7   :  { %v741_v0 = vsel %vm125_vm8, %v737_v63, -inf }
 0x9b8   :  { %742 = vmax.xlane.f32.xlu0 %v741_v0  ;;  %v1464_v0 = vld [vmem:[%s2010_s2 + $0xb] ss:$0 sm:$0xff] }
 0x9bc   :  { %v738_v1 = vpop.f32.mrf.mxu2 }
 0x9bd   :  { %v739_v5 = vadd.f32 %v738_v1, %v1652_v7 }
 0x9bf   :  { %v744_v8 = vsel %vm125_vm8, %v739_v5, -inf }
 0x9c0   :  { %745 = vmax.xlane.f32.xlu2 %v744_v8 }
 0x9d8   :  { %694 = vrot.lane.b32.xlu2 %v647_v49, %s1549_s1 }
 0x9e0   :  { %792 = vrot.lane.b32.xlu2 %v1391_v42, %s1547_s11 }
 0xa0e   :  { %v673_v9 = vpop.xlane.xlu2 %672 }
 0xa0f   :  { %v677_v11 = vsub.f32 %v667_v55, %v673_v9 }
 0xa11   :  { %v679_v13 = vmul.f32 1.442695, %v677_v11 }
 0xa13   :  { %1509 = vpow2.f32 %v679_v13 }
 0xa16   :  { %v676_v14 = vpop.xlane.xlu1 %675 }
 0xa17   :  { %v678_v16 = vsub.f32 %v669_v58, %v676_v14 }
 0xa19   :  { %v1510_v6 = vpop.eup %1509  ;;  %v681_v17 = vmul.f32 1.442695, %v678_v16 }
 0xa1a   :  { %v683_v3 = vsel %vm125_vm8, %v1510_v6, 0.0 }
 0xa1b   :  { %1511 = vpow2.f32 %v681_v17  ;;  %684 = vadd.xlane.f32.xlu1 %v683_v3 }
 0xa21   :  { %v1512_v18 = vpop.eup %1511 }
 0xa22   :  { %v686_v7 = vsel %vm125_vm8, %v1512_v18, 0.0 }
 0xa23   :  { %687 = vadd.xlane.f32.xlu0 %v686_v7 }
 0xa2b   :  { %v743_v19 = vpop.xlane.xlu0 %742 }
 0xa2c   :  { %v747_v21 = vsub.f32 %v737_v63, %v743_v19 }
 0xa2e   :  { %v749_v53 = vmul.f32 1.442695, %v747_v21 }
 0xa30   :  { %1513 = vpow2.f32 %v749_v53 }
 0xa33   :  { %v746_v24 = vpop.xlane.xlu2 %745 }
 0xa34   :  { %v748_v25 = vsub.f32 %v739_v5, %v746_v24 }
 0xa36   :  { %v1514_v26 = vpop.eup %1513  ;;  %v751_v20 = vmul.f32 1.442695, %v748_v25 }
 0xa37   :  { %v753_v27 = vsel %vm125_vm8, %v1514_v26, 0.0 }
 0xa38   :  { %1515 = vpow2.f32 %v751_v20  ;;  %754 = vadd.xlane.f32.xlu1 %v753_v27 }
 0xa3b   :  { %v695_v28 = vpop.permute.xlu2 %694 }
 0xa3c   :  { %707 = vmatpush.bf16.msra.mxu3 %v695_v28 }
 0xa3e   :  { %v1516_v54 = vpop.eup %1515 }
 0xa3f   :  { %v756_v4 = vsel %vm125_vm8, %v1516_v54, 0.0 }
 0xa40   :  { %757 = vadd.xlane.f32.xlu0 %v756_v4 }
 0xa43   :  { %v793_v51 = vpop.permute.xlu2 %792 }
 0xa44   :  { %805 = vmatpush.bf16.msrb.mxu1 %v793_v51 }
 0xa51   :  { %764 = vrot.lane.b32.xlu1 %v647_v49, %s1550_s17 }
 0xa54   :  { %817 = vrot.lane.b32.xlu0 %v1396_v34, %s1547_s11 }
 0xa8e   :  { %v685_v30 = vpop.xlane.xlu1 %684 }
 0xa8f   :  { %1517 = vrcp.f32 %v685_v30 }
 0xa95   :  { %v1518_v35 = vpop.eup %1517 }
 0xa96   :  { %v688_v31 = vpop.xlane.xlu0 %687  ;;  %v691_v36 = vmul.f32 %v1518_v35, %v1510_v6 }
 0xa97   :  { %1519 = vrcp.f32 %v688_v31 }
 0xa9d   :  { %v1520_v15 = vpop.eup %1519 }
 0xa9e   :  { %v692_v38 = vmul.f32 %v1520_v15, %v1512_v18 }
 0xaa0   :  { %v693_v2 = vpack.c.bf16 %v692_v38, %v691_v36 }
 0xaa2   :  { %1385 = vmatmul.msk.bf16.vlgmr.msra.gmra.mxu3 %vm125_vm8, %v693_v2 }
 0xaab   :  { %v755_v45 = vpop.xlane.xlu1 %754 }
 0xab3   :  { %v758_v44 = vpop.xlane.xlu0 %757 }
 0xab4   :  { %1521 = vrcp.f32 %v758_v44 }
 0xab5   :  { %1523 = vrcp.f32 %v755_v45 }
 0xaba   :  { %v1522_v46 = vpop.eup %1521 }
 0xabb   :  { %v1524_v47 = vpop.eup %1523  ;;  %v762_v48 = vmul.f32 %v1522_v46, %v1516_v54 }
 0xabc   :  { %v761_v49 = vmul.f32 %v1524_v47, %v1514_v26  ;;  %v1466_v47 = vld [vmem:[%s2010_s2 + $0xd] ss:$0 sm:$0xff] }
 0xabe   :  { %v763_v61 = vpack.c.bf16 %v762_v48, %v761_v49 }
 0xac3   :  { %v765_v23 = vpop.permute.xlu1 %764 }
 0xac4   :  { %777 = vmatpush.bf16.msrb.mxu0 %v765_v23 }
 0xac6   :  { %v818_v50 = vpop.permute.xlu0 %817 }
 0xac7   :  { %1387 = vmatmul.msk.bf16.vlgmr.msrb.gmra.mxu0 %vm125_vm8, %v763_v61  ;;  %830 = vmatpush.bf16.msrb.mxu3 %v818_v50 }
 0xb25   :  { %v709_v52 = vpop.f32.mrf.mxu3 }
 0xb2d   :  { %v711_v62 = vpop.f32.mrf.mxu3 }
 0xb2e   :  { %v716_v55 = vpack.c.bf16 %v711_v62, %v709_v52  ;;  %v1467_v52 = vld [vmem:[%s2010_s2 + $0xe] ss:$0 sm:$0xff] }
 0xb30   :  { %1397 = vmatmul.msk.bf16.vlgmr.msrb.gmra.mxu3 %vm125_vm8, %v716_v55 }
 0xb44   :  { %v779_v56 = vpop.f32.mrf.mxu0 }
 0xb4c   :  { %v781_v57 = vpop.f32.mrf.mxu0 }
 0xb4d   :  { %v786_v58 = vpack.c.bf16 %v781_v57, %v779_v56 }
 0xb4f   :  { %1392 = vmatmul.msk.bf16.vlgmr.msrb.gmra.mxu1 %vm125_vm8, %v786_v58 }
 0xbb3   :  { %v832_v59 = vpop.f32.mrf.mxu3 }
 0xbbb   :  { %v834_v9 = vpop.f32.mrf.mxu3 }
 0xbcc   :  { %v807_v60 = vpop.f32.mrf.mxu1 }
 0xbcd   :  { %v833_v63 = vadd.f32 %v832_v59, %v807_v60 }
 0xbcf   :  { %v837_v1 = vadd.f32 %v833_v63, %v1812_v40 }
 0xbd1   :  { %v841_v5 = vadd.f32 %v1464_v0, %v837_v1 }
 0xbd3   :  { %v843_v8 = vsel %vm25_vm0, %v841_v5, 0.0 }
 0xbd4   :  { %844 = vadd.xlane.f32.xlu2 %v843_v8  ;;  %v809_v11 = vpop.f32.mrf.mxu1 }
 0xbd5   :  { %v835_v13 = vadd.f32 %v834_v9, %v809_v11 }
 0xbd7   :  { %v838_v14 = vadd.f32 %v835_v13, %v1814_v41 }
 0xbd9   :  { %v842_v16 = vadd.f32 %v1464_v0, %v838_v14 }
 0xbdb   :  { %v846_v6 = vsel %vm25_vm0, %v842_v16, 0.0 }
 0xbdc   :  { %847 = vadd.xlane.f32.xlu0 %v846_v6 }
 0xbf0   :  { %907 = vrot.lane.b32.xlu0 %v1391_v42, %s1549_s1  ;;  %v1465_v42 = vld [vmem:[%s2010_s2 + $0xc] ss:$0 sm:$0xff] }
 0xbf8   :  { %1023 = vrot.lane.b32.xlu0 %v1743_v29, %s1547_s11  ;;  %v1400_v29 = vld [vmem:[%s2011_s3 + $0xc] sm:$0xf] }
 0xc00   :  { %1019 = vrot.lane.b32.xlu0 %v1755_v43, %s1547_s11  ;;  %v1441_v43 = vld [vmem:[%s2011_s3 + $0x1c] sm:$0xf0] }
 0xc01   :  { %v1401_v25 = vor.u32 %v1441_v43, %v1400_v29 }
 0xc47   :  { %v845_v40 = vpop.xlane.xlu2 %844 }
 0xc48   :  { %v849_v17 = vmul.f32 %v845_v40, %v1590_v10 }
 0xc4a   :  { %v851_v3 = vsub.f32 %v841_v5, %v849_v17 }
 0xc4c   :  { %v853_v18 = vmul.f32 %v851_v3, %v851_v3 }
 0xc4e   :  { %v855_v7 = vsel %vm25_vm0, %v853_v18, 0.0 }
 0xc4f   :  { %856 = vadd.xlane.f32.xlu1 %v855_v7  ;;  %v848_v41 = vpop.xlane.xlu0 %847 }
 0xc50   :  { %v850_v19 = vmul.f32 %v848_v41, %v1590_v10 }
 0xc52   :  { %v852_v21 = vsub.f32 %v842_v16, %v850_v19 }
 0xc54   :  { %v854_v53 = vmul.f32 %v852_v21, %v852_v21 }
 0xc56   :  { %v858_v24 = vsel %vm25_vm0, %v854_v53, 0.0 }
 0xc57   :  { %859 = vadd.xlane.f32.xlu2 %v858_v24 }
 0xc62   :  { %v908_v20 = vpop.permute.xlu0 %907 }
 0xc63   :  { %920 = vmatpush.bf16.msra.mxu2 %v908_v20 }
 0xc68   :  { %905 = vrot.lane.b32.xlu1 %v1401_v25, %s1549_s1 }
 0xc6a   :  { %v1024_v29 = vpop.permute.xlu0 %1023 }
 0xc6f   :  { %1025 = vrot.lane.b32.xlu2 %v1737_v22, %s1547_s11 }
 0xc70   :  { %1021 = vrot.lane.b32.xlu1 %v1749_v37, %s1547_s11 }
 0xcc2   :  { %v857_v26 = vpop.xlane.xlu1 %856 }
 0xcc3   :  { %v861_v27 = vmul.f32 %v857_v26, %v1590_v10 }
 0xcc5   :  { %v863_v28 = vadd.f32 1e-05, %v861_v27 }
 0xcc7   :  { %1525 = vrsqrt.f32 %v863_v28  ;;  %vm871_vm1 = vweird.f32 %v863_v28 }
 0xcca   :  { %v860_v54 = vpop.xlane.xlu2 %859 }
 0xccb   :  { %v862_v4 = vmul.f32 %v860_v54, %v1590_v10 }
 0xccd   :  { %v1526_v30 = vpop.eup %1525  ;;  %v864_v31 = vadd.f32 1e-05, %v862_v4 }
 0xcce   :  { %v866_v32 = vmul.f32 %v1526_v30, %v863_v28  ;;  %vm872_vm8 = vweird.f32 %v1526_v30 }
 0xccf   :  { %1527 = vrsqrt.f32 %v864_v31  ;;  %vm873_vm2 = vmor %vm871_vm1, %vm872_vm8  ;;  %vm881_vm4 = vweird.f32 %v864_v31 }
 0xcd0   :  { %v867_v33 = vmul.f32 %v1526_v30, %v866_v32 }
 0xcd2   :  { %v868_v34 = vmul.f32 0.5, %v867_v33 }
 0xcd4   :  { %v869_v22 = vsub.f32 1.5, %v868_v34  ;;  %v1020_v34 = vpop.permute.xlu0 %1019 }
 0xcd5   :  { %v1528_v35 = vpop.eup %1527 }
 0xcd6   :  { %v870_v15 = vmul.f32 %v1526_v30, %v869_v22  ;;  %v876_v37 = vmul.f32 %v1528_v35, %v864_v31  ;;  %vm882_vm3 = vweird.f32 %v1528_v35 }
 0xcd7   :  { %vm883_vm5 = vmor %vm881_vm4, %vm882_vm3 }
 0xcd8   :  { %v877_v36 = vmul.f32 %v1528_v35, %v876_v37  ;;  %v874_v38 = vsel %vm873_vm2, %v1526_v30, %v870_v15 }
 0xcd9   :  { %v885_v44 = vmul.f32 %v874_v38, %v851_v3  ;;  %v1026_v3 = vpop.permute.xlu2 %1025 }
 0xcda   :  { %v878_v2 = vmul.f32 0.5, %v877_v36  ;;  %v906_v12 = vpop.permute.xlu1 %905  ;;  %1038 = vmatpush.bf16.msra.mxu0 %v1026_v3 }
 0xcdb   :  { %921 = vmatpush.bf16.msra.mxu2 %v906_v12  ;;  %v889_v48 = vmul.f32 %v1465_v42, %v885_v44 }
 0xcdc   :  { %v879_v39 = vsub.f32 1.5, %v878_v2 }
 0xcdd   :  { %v1896_v61 = vadd.f32 %v1466_v47, %v889_v48 }
 0xcde   :  { %v880_v45 = vmul.f32 %v1528_v35, %v879_v39  ;;  %1039 = vmatpush.bf16.msra.mxu0 %v1024_v29 }
 0xce0   :  { %v884_v46 = vsel %vm883_vm5, %v1528_v35, %v880_v45 }
 0xce1   :  { %v886_v49 = vmul.f32 %v884_v46, %v852_v21 }
 0xce2   :  { %v1022_v54 = vpop.permute.xlu1 %1021 }
 0xce3   :  { %v890_v23 = vmul.f32 %v1465_v42, %v886_v49  ;;  %1040 = vmatpush.bf16.msra.mxu0 %v1022_v54 }
 0xce5   :  { %v1898_v50 = vadd.f32 %v1466_v47, %v890_v23 }
 0xce7   :  { %v897_v51 = vpack.c.bf16 %v1898_v50, %v1896_v61  ;;  %1041 = vmatpush.bf16.msra.mxu0 %v1020_v34 }
 0xce9   :  { %1402 = vmatmul.msk.bf16.vlgmr.msra.gmra.mxu2 %vm25_vm0, %v897_v51 }
 0xd6c   :  { %v923_v62 = vpop.f32.mrf.mxu2 }
 0xd6d   :  { %v1906_v55 = vadd.f32 %v1467_v52, %v923_v62 }
 0xd6f   :  { %v1909_v56 = vmul.f32 0.70710677, %v1906_v55 }
 0xd71   :  { %v932_v57 = vmul.f32 %v1909_v56, %v1909_v56 }
 0xd73   :  { %v933_v58 = vmin.f32 %v932_v57, 16.0 }
 0xd74   :  { %v925_v59 = vpop.f32.mrf.mxu2 }
 0xd75   :  { %v934_v60 = vmul.f32 2.1237322e-06, %v933_v58  ;;  %v945_v63 = vmul.f32 3.8918573e-05, %v933_v58  ;;  %v1913_v0 = vadd.f32 %v1467_v52, %v925_v59 }
 0xd77   :  { %v935_v1 = vadd.f32 0.00028619796, %v934_v60  ;;  %v946_v5 = vadd.f32 0.001143296, %v945_v63  ;;  %v1916_v8 = vmul.f32 0.70710677, %v1913_v0 }
 0xd79   :  { %v947_v9 = vmul.f32 %v946_v5, %v933_v58  ;;  %v972_v11 = vmul.f32 %v1916_v8, %v1916_v8  ;;  %v936_v13 = vmul.f32 %v935_v1, %v933_v58 }
 0xd7b   :  { %v948_v14 = vadd.f32 0.014752088, %v947_v9  ;;  %v973_v16 = vmin.f32 %v972_v11, 16.0  ;;  %v937_v18 = vadd.f32 0.0036580483, %v936_v13 }
 0xd7d   :  { %v949_v6 = vmul.f32 %v948_v14, %v933_v58  ;;  %v974_v40 = vmul.f32 2.1237322e-06, %v973_v16  ;;  %v985_v17 = vmul.f32 3.8918573e-05, %v973_v16  ;;  %v938_v43 = vmul.f32 %v937_v18, %v933_v58 }
 0xd7f   :  { %v950_v7 = vadd.f32 0.112945676, %v949_v6  ;;  %v975_v41 = vadd.f32 0.00028619796, %v974_v40  ;;  %v986_v19 = vadd.f32 0.001143296, %v985_v17 }
 0xd80   :  { %v939_v4 = vadd.f32 0.05243302, %v938_v43 }
 0xd81   :  { %v951_v21 = vmul.f32 %v950_v7, %v933_v58  ;;  %v976_v53 = vmul.f32 %v975_v41, %v973_v16  ;;  %v987_v24 = vmul.f32 %v986_v19, %v973_v16  ;;  %v928_v41 = vmul.f32 0.5, %v1906_v55 }
 0xd82   :  { %v940_v22 = vmul.f32 %v939_v4, %v933_v58  ;;  %v929_v19 = vmul.f32 0.5, %v1913_v0 }
 0xd83   :  { %v952_v25 = vadd.f32 0.4994258, %v951_v21  ;;  %v977_v26 = vadd.f32 0.0036580483, %v976_v53  ;;  %v988_v20 = vadd.f32 0.014752088, %v987_v24 }
 0xd84   :  { %v941_v38 = vadd.f32 0.18741608, %v940_v22 }
 0xd85   :  { %v953_v27 = vmul.f32 %v952_v25, %v933_v58  ;;  %v989_v28 = vmul.f32 %v988_v20, %v973_v16  ;;  %v978_v31 = vmul.f32 %v977_v26, %v973_v16 }
 0xd86   :  { %v942_v44 = vmul.f32 %v941_v38, %v933_v58 }
 0xd87   :  { %v954_v30 = vadd.f32 1.0, %v953_v27  ;;  %v990_v32 = vadd.f32 0.112945676, %v989_v28  ;;  %v979_v35 = vadd.f32 0.05243302, %v978_v31 }
 0xd88   :  { %v943_v23 = vadd.f32 1.1283791, %v942_v44 }
 0xd89   :  { %1529 = vrcp.f32 %v954_v30  ;;  %v991_v33 = vmul.f32 %v990_v32, %v973_v16  ;;  %v980_v12 = vmul.f32 %v979_v35, %v973_v16  ;;  %v966_v46 = vand.u32 2147483648, %v954_v30 }
 0xd8a   :  { %v964_v48 = vand.u32 2147483647, %v954_v30  ;;  %vm960_vm7 = vweird.f32 %v954_v30  ;;  %v944_v63 = vmul.f32 %v943_v23, %v1909_v56 }
 0xd8b   :  { %v992_v15 = vadd.f32 0.4994258, %v991_v33  ;;  %v981_v47 = vadd.f32 0.18741608, %v980_v12  ;;  %v967_v62 = vor.u32 1.1754944e-38, %v966_v46 }
 0xd8c   :  { %vm965_vm11 = vcmp.eq.f32.partialorder %v964_v48, 8.507059e+37  ;;  %v1442_v12 = vld [vmem:[%s2011_s3 + $0x20] sm:$0xf0] }
 0xd8d   :  { %v993_v37 = vmul.f32 %v992_v15, %v973_v16  ;;  %v982_v57 = vmul.f32 %v981_v47, %v973_v16  ;;  %v1443_v15 = vld [vmem:[%s2011_s3 + $0x48] sm:$0xf0] }
 0xd8f   :  { %v1530_v36 = vpop.eup %1529  ;;  %v994_v39 = vadd.f32 1.0, %v993_v37  ;;  %v983_v58 = vadd.f32 1.1283791, %v982_v57 }
 0xd90   :  { %v956_v2 = vmul.f32 %v1530_v36, %v954_v30  ;;  %vm961_vm6 = vweird.f32 %v1530_v36 }
 0xd91   :  { %1531 = vrcp.f32 %v994_v39  ;;  %vm962_vm10 = vmor %vm960_vm7, %vm961_vm6  ;;  %v1006_v5 = vand.u32 2147483648, %v994_v39  ;;  %v1004_v13 = vand.u32 2147483647, %v994_v39  ;;  %vm1000_vm13 = vweird.f32 %v994_v39 }
 0xd92   :  { %v957_v42 = vsub.f32 1.0, %v956_v2  ;;  %v984_v17 = vmul.f32 %v983_v58, %v1916_v8  ;;  %v1468_v8 = vld [vmem:[%s2010_s2 + $0xf] ss:$0 sm:$0xff]  ;;  %v1408_v2 = vld [vmem:[%s2011_s3 + $0x10] sm:$0xf] }
 0xd93   :  { %v1007_v6 = vor.u32 1.1754944e-38, %v1006_v5  ;;  %vm1005_vm15 = vcmp.eq.f32.partialorder %v1004_v13, 8.507059e+37  ;;  %v1469_v58 = vld [vmem:[%s2010_s2 + $0x10] ss:$0 sm:$0xff]  ;;  %v1470_v13 = vld [vmem:[%s2010_s2 + $0x11] ss:$0 sm:$0xff] }
 0xd94   :  { %v958_v45 = vmul.f32 %v1530_v36, %v957_v42  ;;  %v1409_v42 = vor.u32 %v1442_v12, %v1408_v2 }
 0xd96   :  { %v959_v49 = vadd.f32 %v1530_v36, %v958_v45 }
 0xd97   :  { %v1532_v51 = vpop.eup %1531 }
 0xd98   :  { %v963_v52 = vsel %vm962_vm10, %v1530_v36, %v959_v49  ;;  %v996_v59 = vmul.f32 %v1532_v51, %v994_v39  ;;  %vm1001_vm12 = vweird.f32 %v1532_v51 }
 0xd99   :  { %v968_v60 = vsel %vm965_vm11, %v967_v62, %v963_v52  ;;  %vm1002_vm14 = vmor %vm1000_vm13, %vm1001_vm12 }
 0xd9a   :  { %v997_v1 = vsub.f32 1.0, %v996_v59  ;;  %v969_v9 = vmul.f32 %v968_v60, %v944_v63 }
 0xd9c   :  { %v998_v11 = vmul.f32 %v1532_v51, %v997_v1  ;;  %v1403_v40 = vclamps-f32 %v969_v9, 1.0 }
 0xd9e   :  { %v999_v14 = vadd.f32 %v1532_v51, %v998_v11  ;;  %v1012_v7 = vadd.f32 1.0, %v1403_v40 }
 0xda0   :  { %v1003_v16 = vsel %vm1002_vm14, %v1532_v51, %v999_v14  ;;  %v1014_v53 = vmul.f32 %v1012_v7, %v928_v41 }
 0xda1   :  { %v1008_v3 = vsel %vm1005_vm15, %v1007_v6, %v1003_v16 }
 0xda2   :  { %v1009_v18 = vmul.f32 %v1008_v3, %v984_v17 }
 0xda4   :  { %v1404_v56 = vclamps-f32 %v1009_v18, 1.0  ;;  %v1471_v18 = vld [vmem:[%s2010_s2 + $0x12] ss:$0 sm:$0xff] }
 0xda6   :  { %v1013_v21 = vadd.f32 1.0, %v1404_v56 }
 0xda8   :  { %v1015_v24 = vmul.f32 %v1013_v21, %v929_v19 }
 0xdaa   :  { %v1016_v29 = vpack.c.bf16 %v1015_v24, %v1014_v53 }
 0xdac   :  { %1405 = vmatmul.msk.bf16.vlgmr.msra.gmra.mxu0 %vm522_vm9, %v1016_v29 }
 0xe29   :  { %v1043_v43 = vpop.f32.mrf.mxu0 }
 0xe2a   :  { %v1044_v25 = vadd.f32 %v1468_v8, %v1043_v43 }
 0xe2c   :  { %v1048_v26 = vadd.f32 %v1044_v25, %v1896_v61 }
 0xe2e   :  { %v1050_v20 = vsel %vm25_vm0, %v1048_v26, 0.0 }
 0xe2f   :  { %1051 = vadd.xlane.f32.xlu2 %v1050_v20 }
 0xe31   :  { %v1045_v55 = vpop.f32.mrf.mxu0 }
 0xe32   :  { %v1046_v27 = vadd.f32 %v1468_v8, %v1045_v55 }
 0xe34   :  { %v1049_v0 = vadd.f32 %v1046_v27, %v1898_v50  ;;  %v1412_v50 = vld [vmem:[%s2011_s3 + $0x38] sm:$0xf] }
 0xe35   :  { %v1413_v37 = vor.u32 %v1443_v15, %v1412_v50 }
 0xe36   :  { %v1053_v28 = vsel %vm25_vm0, %v1049_v0, 0.0 }
 0xe37   :  { %1054 = vadd.xlane.f32.xlu1 %v1053_v28  ;;  %1130 = vmatpush.bf16.msra.mxu1 %v1413_v37 }
 0xe3b   :  { %1131 = vmatpush.bf16.msra.mxu1 %v1409_v42 }
 0xea2   :  { %v1052_v54 = vpop.xlane.xlu2 %1051 }
 0xea3   :  { %v1056_v4 = vmul.f32 %v1052_v54, %v1590_v10 }
 0xea5   :  { %v1058_v30 = vsub.f32 %v1048_v26, %v1056_v4 }
 0xea7   :  { %v1060_v31 = vmul.f32 %v1058_v30, %v1058_v30 }
 0xea9   :  { %v1062_v32 = vsel %vm25_vm0, %v1060_v31, 0.0 }
 0xeaa   :  { %v1055_v33 = vpop.xlane.xlu1 %1054  ;;  %1063 = vadd.xlane.f32.xlu0 %v1062_v32 }
 0xeab   :  { %v1057_v61 = vmul.f32 %v1055_v33, %v1590_v10 }
 0xead   :  { %v1059_v34 = vsub.f32 %v1049_v0, %v1057_v61 }
 0xeaf   :  { %v1061_v22 = vmul.f32 %v1059_v34, %v1059_v34 }
 0xeb1   :  { %v1065_v35 = vsel %vm25_vm0, %v1061_v22, 0.0 }
 0xeb2   :  { %1066 = vadd.xlane.f32.xlu2 %v1065_v35 }
 0xf1d   :  { %v1064_v36 = vpop.xlane.xlu0 %1063 }
 0xf1e   :  { %v1068_v38 = vmul.f32 %v1064_v36, %v1590_v10 }
 0xf20   :  { %v1070_v39 = vadd.f32 1e-05, %v1068_v38 }
 0xf22   :  { %1533 = vrsqrt.f32 %v1070_v39  ;;  %vm1078_vm8 = vweird.f32 %v1070_v39 }
 0xf25   :  { %v1067_v44 = vpop.xlane.xlu2 %1066 }
 0xf26   :  { %v1069_v45 = vmul.f32 %v1067_v44, %v1590_v10 }
 0xf28   :  { %v1534_v46 = vpop.eup %1533  ;;  %v1071_v47 = vadd.f32 1e-05, %v1069_v45 }
 0xf29   :  { %v1073_v48 = vmul.f32 %v1534_v46, %v1070_v39  ;;  %vm1079_vm9 = vweird.f32 %v1534_v46 }
 0xf2a   :  { %1535 = vrsqrt.f32 %v1071_v47  ;;  %vm1080_vm1 = vmor %vm1078_vm8, %vm1079_vm9  ;;  %vm1088_vm3 = vweird.f32 %v1071_v47 }
 0xf2b   :  { %v1074_v49 = vmul.f32 %v1534_v46, %v1073_v48 }
 0xf2d   :  { %v1075_v23 = vmul.f32 0.5, %v1074_v49 }
 0xf2f   :  { %v1076_v51 = vsub.f32 1.5, %v1075_v23 }
 0xf30   :  { %v1536_v52 = vpop.eup %1535 }
 0xf31   :  { %v1077_v62 = vmul.f32 %v1534_v46, %v1076_v51  ;;  %v1083_v57 = vmul.f32 %v1536_v52, %v1071_v47  ;;  %vm1089_vm2 = vweird.f32 %v1536_v52 }
 0xf32   :  { %vm1090_vm4 = vmor %vm1088_vm3, %vm1089_vm2 }
 0xf33   :  { %v1084_v59 = vmul.f32 %v1536_v52, %v1083_v57  ;;  %v1081_v60 = vsel %vm1080_vm1, %v1534_v46, %v1077_v62 }
 0xf34   :  { %v1092_v5 = vmul.f32 %v1081_v60, %v1058_v30 }
 0xf35   :  { %v1085_v63 = vmul.f32 0.5, %v1084_v59 }
 0xf36   :  { %v1096_v14 = vmul.f32 %v1469_v58, %v1092_v5 }
 0xf37   :  { %v1086_v1 = vsub.f32 1.5, %v1085_v63 }
 0xf38   :  { %v1100_v17 = vadd.f32 %v1470_v13, %v1096_v14 }
 0xf39   :  { %v1087_v9 = vmul.f32 %v1536_v52, %v1086_v1 }
 0xf3b   :  { %v1091_v11 = vsel %vm1090_vm4, %v1536_v52, %v1087_v9 }
 0xf3c   :  { %v1093_v6 = vmul.f32 %v1091_v11, %v1059_v34 }
 0xf3e   :  { %v1097_v40 = vmul.f32 %v1469_v58, %v1093_v6 }
 0xf40   :  { %v1101_v16 = vadd.f32 %v1470_v13, %v1097_v40 }
 0xf42   :  { %v1106_v3 = vpack.c.bf16 %v1101_v16, %v1100_v17 }
 0xf44   :  { %1414 = vmatmul.msk.bf16.vlgmr.msra.gmra.mxu1 %vm25_vm0, %v1106_v3 }
 0xfc1   :  { %v1133_v7 = vpop.f32.mrf.mxu1 }
 0xfc2   :  { %v1960_v56 = vadd.f32 %v1471_v18, %v1133_v7 }
 0xfc4   :  { %v1140_v41 = vmul.f32 0.70710677, %v1960_v56 }
 0xfc6   :  { %v1142_v19 = vmul.f32 %v1140_v41, %v1140_v41 }
 0xfc8   :  { %v1143_v21 = vmin.f32 %v1142_v19, 16.0 }
 0xfc9   :  { %v1135_v53 = vpop.f32.mrf.mxu1 }
 0xfca   :  { %v1144_v24 = vmul.f32 2.1237322e-06, %v1143_v21  ;;  %v1963_v29 = vadd.f32 %v1471_v18, %v1135_v53  ;;  %v1155_v8 = vmul.f32 3.8918573e-05, %v1143_v21 }
 0xfcc   :  { %v1145_v43 = vadd.f32 0.00028619796, %v1144_v24  ;;  %v1966_v25 = vmul.f32 0.70710677, %v1963_v29  ;;  %v1156_v26 = vadd.f32 0.001143296, %v1155_v8 }
 0xfce   :  { %v1146_v20 = vmul.f32 %v1145_v43, %v1143_v21  ;;  %v1182_v55 = vmul.f32 %v1966_v25, %v1966_v25  ;;  %v1157_v27 = vmul.f32 %v1156_v26, %v1143_v21  ;;  %v1138_v26 = vmul.f32 0.5, %v1960_v56 }
 0xfd0   :  { %v1183_v0 = vmin.f32 %v1182_v55, 16.0  ;;  %v1158_v28 = vadd.f32 0.014752088, %v1157_v27  ;;  %v1147_v54 = vadd.f32 0.0036580483, %v1146_v20 }
 0xfd2   :  { %v1184_v4 = vmul.f32 2.1237322e-06, %v1183_v0  ;;  %v1195_v30 = vmul.f32 3.8918573e-05, %v1183_v0  ;;  %v1159_v31 = vmul.f32 %v1158_v28, %v1143_v21  ;;  %v1148_v34 = vmul.f32 %v1147_v54, %v1143_v21 }
 0xfd4   :  { %v1185_v32 = vadd.f32 0.00028619796, %v1184_v4  ;;  %v1196_v33 = vadd.f32 0.001143296, %v1195_v30  ;;  %v1160_v61 = vadd.f32 0.112945676, %v1159_v31 }
 0xfd5   :  { %v1149_v38 = vadd.f32 0.05243302, %v1148_v34  ;;  %v1139_v31 = vmul.f32 0.5, %v1963_v29 }
 0xfd6   :  { %v1186_v22 = vmul.f32 %v1185_v32, %v1183_v0  ;;  %v1197_v35 = vmul.f32 %v1196_v33, %v1183_v0  ;;  %v1161_v50 = vmul.f32 %v1160_v61, %v1143_v21 }
 0xfd7   :  { %v1150_v45 = vmul.f32 %v1149_v38, %v1143_v21  ;;  %v1423_v38 = vld [vmem:[%s2011_s3 + $0x28] sm:$0xf] }
 0xfd8   :  { %v1198_v15 = vadd.f32 0.014752088, %v1197_v35  ;;  %v1187_v37 = vadd.f32 0.0036580483, %v1186_v22  ;;  %v1162_v36 = vadd.f32 0.4994258, %v1161_v50 }
 0xfd9   :  { %v1151_v49 = vadd.f32 0.18741608, %v1150_v45  ;;  %v1444_v45 = vld [vmem:[%s2011_s3 + $0x10] sm:$0xf0] }
 0xfda   :  { %v1199_v2 = vmul.f32 %v1198_v15, %v1183_v0  ;;  %v1163_v12 = vmul.f32 %v1162_v36, %v1143_v21  ;;  %v1188_v42 = vmul.f32 %v1187_v37, %v1183_v0 }
 0xfdb   :  { %v1152_v57 = vmul.f32 %v1151_v49, %v1143_v21 }
 0xfdc   :  { %v1200_v39 = vadd.f32 0.112945676, %v1199_v2  ;;  %v1164_v44 = vadd.f32 1.0, %v1163_v12  ;;  %v1189_v48 = vadd.f32 0.05243302, %v1188_v42 }
 0xfdd   :  { %v1153_v58 = vadd.f32 1.1283791, %v1152_v57  ;;  %v1445_v2 = vld [vmem:[%s2011_s3 + $0x38] sm:$0xf0] }
 0xfde   :  { %v1201_v46 = vmul.f32 %v1200_v39, %v1183_v0  ;;  %1537 = vrcp.f32 %v1164_v44  ;;  %v1190_v62 = vmul.f32 %v1189_v48, %v1183_v0  ;;  %v1176_v1 = vand.u32 2147483648, %v1164_v44 }
 0xfdf   :  { %v1174_v9 = vand.u32 2147483647, %v1164_v44  ;;  %vm1170_vm6 = vweird.f32 %v1164_v44  ;;  %v1154_v17 = vmul.f32 %v1153_v58, %v1140_v41  ;;  %v1424_v12 = vor.u32 %v1445_v2, %v1423_v38 }
 0xfe0   :  { %v1202_v47 = vadd.f32 0.4994258, %v1201_v46  ;;  %v1191_v63 = vadd.f32 0.18741608, %v1190_v62  ;;  %v1177_v6 = vor.u32 1.1754944e-38, %v1176_v1 }
 0xfe1   :  { %vm1175_vm10 = vcmp.eq.f32.partialorder %v1174_v9, 8.507059e+37  ;;  %1306 = vmatpush.bf16.msra.mxu3 %v1424_v12 }
 0xfe2   :  { %v1203_v23 = vmul.f32 %v1202_v47, %v1183_v0  ;;  %v1192_v14 = vmul.f32 %v1191_v63, %v1183_v0 }
 0xfe4   :  { %v1204_v51 = vadd.f32 1.0, %v1203_v23  ;;  %v1538_v52 = vpop.eup %1537  ;;  %v1193_v21 = vadd.f32 1.1283791, %v1192_v14 }
 0xfe5   :  { %v1166_v59 = vmul.f32 %v1538_v52, %v1164_v44  ;;  %vm1171_vm5 = vweird.f32 %v1538_v52  ;;  %v1419_v44 = vld [vmem:[%s2011_s3] sm:$0xf] }
 0xfe6   :  { %1539 = vrcp.f32 %v1204_v51  ;;  %vm1172_vm7 = vmor %vm1170_vm6, %vm1171_vm5  ;;  %v1216_v19 = vand.u32 2147483648, %v1204_v51  ;;  %v1214_v24 = vand.u32 2147483647, %v1204_v51  ;;  %vm1210_vm12 = vweird.f32 %v1204_v51 }
 0xfe7   :  { %v1167_v60 = vsub.f32 1.0, %v1166_v59  ;;  %v1194_v41 = vmul.f32 %v1193_v21, %v1966_v25  ;;  %v1420_v46 = vor.u32 %v1444_v45, %v1419_v44  ;;  %v1474_v21 = vld [vmem:[%s2010_s2 + $0x15] ss:$0 sm:$0xff] }
 0xfe8   :  { %v1217_v55 = vor.u32 1.1754944e-38, %v1216_v19  ;;  %vm1215_vm14 = vcmp.eq.f32.partialorder %v1214_v24, 8.507059e+37 }
 0xfe9   :  { %v1168_v5 = vmul.f32 %v1538_v52, %v1167_v60  ;;  %1307 = vmatpush.bf16.msra.mxu3 %v1420_v46 }
 0xfeb   :  { %v1169_v13 = vadd.f32 %v1538_v52, %v1168_v5 }
 0xfec   :  { %v1540_v11 = vpop.eup %1539 }
 0xfed   :  { %v1206_v40 = vmul.f32 %v1540_v11, %v1204_v51  ;;  %v1173_v16 = vsel %vm1172_vm7, %v1538_v52, %v1169_v13  ;;  %vm1211_vm11 = vweird.f32 %v1540_v11 }
 0xfee   :  { %v1178_v3 = vsel %vm1175_vm10, %v1177_v6, %v1173_v16  ;;  %vm1212_vm13 = vmor %vm1210_vm12, %vm1211_vm11 }
 0xfef   :  { %v1207_v18 = vsub.f32 1.0, %v1206_v40  ;;  %v1179_v7 = vmul.f32 %v1178_v3, %v1154_v17  ;;  %v1473_v40 = vld [vmem:[%s2010_s2 + $0x14] ss:$0 sm:$0xff] }
 0xff1   :  { %v1208_v53 = vmul.f32 %v1540_v11, %v1207_v18  ;;  %v1415_v8 = vclamps-f32 %v1179_v7, 1.0 }
 0xff3   :  { %v1209_v43 = vadd.f32 %v1540_v11, %v1208_v53  ;;  %v1222_v20 = vadd.f32 1.0, %v1415_v8 }
 0xff5   :  { %v1213_v27 = vsel %vm1212_vm13, %v1540_v11, %v1209_v43  ;;  %v1224_v0 = vmul.f32 %v1222_v20, %v1138_v26 }
 0xff6   :  { %v1218_v28 = vsel %vm1215_vm14, %v1217_v55, %v1213_v27 }
 0xff7   :  { %v1219_v54 = vmul.f32 %v1218_v28, %v1194_v41  ;;  %v1226_v4 = vsel %vm25_vm0, %v1224_v0, 0.0 }
 0xff8   :  { %1227 = vadd.xlane.f32.xlu1 %v1226_v4 }
 0xff9   :  { %v1416_v30 = vclamps-f32 %v1219_v54, 1.0 }
 0xffb   :  { %v1223_v32 = vadd.f32 1.0, %v1416_v30 }
 0xffd   :  { %v1225_v33 = vmul.f32 %v1223_v32, %v1139_v31 }
 0xfff   :  { %v1229_v56 = vsel %vm25_vm0, %v1225_v33, 0.0 }
0x1000   :  { %1230 = vadd.xlane.f32.xlu2 %v1229_v56 }
0x106b   :  { %v1228_v61 = vpop.xlane.xlu1 %1227 }
0x106c   :  { %v1232_v34 = vmul.f32 %v1228_v61, %v1590_v10 }
0x106e   :  { %v1234_v25 = vsub.f32 %v1224_v0, %v1232_v34 }
0x1070   :  { %v1236_v22 = vmul.f32 %v1234_v25, %v1234_v25 }
0x1072   :  { %v1238_v50 = vsel %vm25_vm0, %v1236_v22, 0.0 }
0x1073   :  { %v1231_v35 = vpop.xlane.xlu2 %1230  ;;  %1239 = vadd.xlane.f32.xlu0 %v1238_v50 }
0x1074   :  { %v1233_v15 = vmul.f32 %v1231_v35, %v1590_v10 }
0x1076   :  { %v1235_v37 = vsub.f32 %v1225_v33, %v1233_v15 }
0x1078   :  { %v1237_v36 = vmul.f32 %v1235_v37, %v1235_v37 }
0x107a   :  { %v1241_v29 = vsel %vm25_vm0, %v1237_v36, 0.0 }
0x107b   :  { %1242 = vadd.xlane.f32.xlu1 %v1241_v29 }
0x10e6   :  { %v1240_v39 = vpop.xlane.xlu0 %1239 }
0x10e7   :  { %v1244_v42 = vmul.f32 %v1240_v39, %v1590_v10 }
0x10e9   :  { %v1246_v47 = vadd.f32 1e-05, %v1244_v42 }
0x10eb   :  { %1541 = vrsqrt.f32 %v1246_v47  ;;  %vm1254_vm9 = vweird.f32 %v1246_v47 }
0x10ee   :  { %v1243_v48 = vpop.xlane.xlu1 %1242 }
0x10ef   :  { %v1245_v49 = vmul.f32 %v1243_v48, %v1590_v10  ;;  %v1472_v10 = vld [vmem:[%s2010_s2 + $0x13] ss:$0 sm:$0xff] }
0x10f1   :  { %v1247_v23 = vadd.f32 1e-05, %v1245_v49  ;;  %v1542_v51 = vpop.eup %1541 }
0x10f2   :  { %v1249_v52 = vmul.f32 %v1542_v51, %v1246_v47  ;;  %vm1255_vm15 = vweird.f32 %v1542_v51 }
0x10f3   :  { %1543 = vrsqrt.f32 %v1247_v23  ;;  %vm1256_vm8 = vmor %vm1254_vm9, %vm1255_vm15  ;;  %vm1264_vm2 = vweird.f32 %v1247_v23 }
0x10f4   :  { %v1250_v62 = vmul.f32 %v1542_v51, %v1249_v52 }
0x10f6   :  { %v1251_v57 = vmul.f32 0.5, %v1250_v62 }
0x10f8   :  { %v1252_v60 = vsub.f32 1.5, %v1251_v57 }
0x10f9   :  { %v1544_v59 = vpop.eup %1543 }
0x10fa   :  { %v1259_v63 = vmul.f32 %v1544_v59, %v1247_v23  ;;  %v1253_v1 = vmul.f32 %v1542_v51, %v1252_v60  ;;  %vm1265_vm1 = vweird.f32 %v1544_v59 }
0x10fb   :  { %vm1266_vm3 = vmor %vm1264_vm2, %vm1265_vm1 }
0x10fc   :  { %v1260_v58 = vmul.f32 %v1544_v59, %v1259_v63  ;;  %v1257_v5 = vsel %vm1256_vm8, %v1542_v51, %v1253_v1 }
0x10fd   :  { %v1268_v13 = vmul.f32 %v1257_v5, %v1234_v25 }
0x10fe   :  { %v1261_v9 = vmul.f32 0.5, %v1260_v58 }
0x10ff   :  { %v1272_v17 = vmul.f32 %v1472_v10, %v1268_v13 }
0x1100   :  { %v1262_v11 = vsub.f32 1.5, %v1261_v9 }
0x1101   :  { %v1276_v18 = vadd.f32 %v1473_v40, %v1272_v17 }
0x1102   :  { %v1263_v14 = vmul.f32 %v1544_v59, %v1262_v11 }
0x1104   :  { %v1267_v6 = vsel %vm1266_vm3, %v1544_v59, %v1263_v14 }
0x1105   :  { %v1269_v16 = vmul.f32 %v1267_v6, %v1235_v37 }
0x1107   :  { %v1273_v3 = vmul.f32 %v1472_v10, %v1269_v16 }
0x1109   :  { %v1277_v7 = vadd.f32 %v1473_v40, %v1273_v3 }
0x110b   :  { %v1282_v19 = vpack.c.bf16 %v1277_v7, %v1276_v18 }
0x110d   :  { %1425 = vmatmul.msk.bf16.vlgmr.msra.gmra.mxu3 %vm25_vm0, %v1282_v19 }
0x1190   :  { %v1309_v53 = vpop.f32.mrf.mxu3 }
0x1191   :  { %v1310_v24 = vadd.f32 %v1474_v21, %v1309_v53 }
0x1193   :  { %1314 = vst [vmem:[%s2014_s5] sm:$0xff] %v1310_v24 }
0x1198   :  { %v1311_v8 = vpop.f32.mrf.mxu3 }
0x1199   :  { %v1312_v43 = vadd.f32 %v1474_v21, %v1311_v8 }
0x119b   :  { %1315 = vst [vmem:[%s2014_s5 + $0x8] sm:$0xff] %v1312_v43 }

</bundles_post_ra>
